<compile_context>
chip_gen: v6e
topology: v6e:2x2x1
jax: 0.10.0
libtpu: 0.0.40
codegen_flags: <defaults>
</compile_context>

<pallas_src>
import functools
import math

import numpy as np
import jax
import jax.numpy as jnp
from jax import lax
from jax.experimental import pallas as pl
from jax.experimental.pallas import tpu as pltpu


# ---------------------------------------------------------------------------
# Tiling / compiler-param helpers
# ---------------------------------------------------------------------------
_TM, _TN, _TK = 256, 512, 512      # MXU/lane-friendly caps.


def _pick_tile(dim, cap):
    """Largest divisor of `dim` that is <= cap (the full dim if dim <= cap)."""
    if dim <= cap:
        return dim
    for t in range(cap, 0, -1):
        if dim % t == 0:
            return t
    return dim


def _device_kind():
    try:
        return jax.devices()[0].device_kind.lower()
    except Exception:
        return ""


_KIND = _device_kind()
_IS_V5E = ("v5e" in _KIND) or ("v5 lite" in _KIND) or ("v5litepod" in _KIND)
_IS_V7 = "v7" in _KIND
# 256-deep MXU on v6e/v7x wants 256-wide attention tiles; v5e's 128x128 does not.
_ATTN_TILE = 128 if _IS_V5E else 256


def _detect_vmem_limit():
    try:
        cap = getattr(pltpu.get_tpu_info(), "vmem_capacity_bytes", None)
        if cap:
            return int(cap) * 3 // 4
    except Exception:
        pass
    # Explicit per-generation fallback: default scoped VMEM (16-32 MiB) is too
    # small for these tiles; ~100 MiB on v5e/v6e (128 MiB phys), ~48 MiB on v7x.
    return (48 if _IS_V7 else 100) * 1024 * 1024


_VMEM_LIMIT = _detect_vmem_limit()


def _cparams(dims):
    return pltpu.CompilerParams(dimension_semantics=dims,
                                vmem_limit_bytes=_VMEM_LIMIT)


# ---------------------------------------------------------------------------
# Kernel 1: fused LayerNorm + Linear (+ optional GELU), LN cached across N sweep
# ---------------------------------------------------------------------------
def _ln_linear_kernel(x_ref, g_ref, b_ref, w_ref, bias_ref, o_ref, xn_ref, *,
                      eps, activation):
    # LN(x) is computed once per M tile (first column step) into a bf16 VMEM
    # scratch and reused across the entire N / vocab sweep.
    @pl.when(pl.program_id(1) == 0)
    def _():
        x = x_ref[...].astype(jnp.float32)
        mu = jnp.mean(x, axis=-1, keepdims=True)
        xc = x - mu
        var = jnp.mean(xc * xc, axis=-1, keepdims=True)
        xn = xc * lax.rsqrt(var + eps) * g_ref[...] + b_ref[...]
        xn_ref[...] = xn.astype(xn_ref.dtype)

    y = jnp.dot(xn_ref[...], w_ref[...],
                preferred_element_type=jnp.float32) + bias_ref[...]
    if activation == "gelu":
        # TODO(synk): tanh-approx GELU; PyTorch nn.GELU default is exact erf.
        y = jax.nn.gelu(y, approximate=True)
    o_ref[...] = y.astype(o_ref.dtype)


def ln_linear_pallas(x2d, gamma, beta, w, bias, *, activation=None,
                     out_dtype=jnp.bfloat16, eps=1e-5):
    """out = act(LayerNorm(x2d) @ w + bias); K un-tiled (LN stats exact)."""
    M, K = x2d.shape
    K2, N = w.shape
    assert K == K2
    tm, tn = _pick_tile(M, _TM), _pick_tile(N, _TN)
    return pl.pallas_call(
        functools.partial(_ln_linear_kernel, eps=eps, activation=activation),
        out_shape=jax.ShapeDtypeStruct((M, N), out_dtype),
        grid=(M // tm, N // tn),
        in_specs=[
            pl.BlockSpec((tm, K), lambda i, j: (i, 0)),
            pl.BlockSpec((1, K), lambda i, j: (0, 0)),
            pl.BlockSpec((1, K), lambda i, j: (0, 0)),
            pl.BlockSpec((K, tn), lambda i, j: (0, j)),
            pl.BlockSpec((1, tn), lambda i, j: (0, j)),
        ],
        out_specs=pl.BlockSpec((tm, tn), lambda i, j: (i, j)),
        scratch_shapes=[pltpu.VMEM((tm, K), jnp.bfloat16)],
        compiler_params=_cparams(("parallel", "arbitrary")),
    )(x2d, gamma.reshape(1, K), beta.reshape(1, K), w, bias.reshape(1, N))


# ---------------------------------------------------------------------------
# Kernel 2: fused LayerNorm + per-head QKV projection, head-major output
# ---------------------------------------------------------------------------
def _ln_qkv_heads_kernel(x_ref, g_ref, b_ref, w_ref, bias_ref, o_ref, xn_ref, *,
                         eps):
    @pl.when(pl.program_id(1) == 0)
    def _():
        x = x_ref[...].astype(jnp.float32)
        mu = jnp.mean(x, axis=-1, keepdims=True)
        xc = x - mu
        var = jnp.mean(xc * xc, axis=-1, keepdims=True)
        xn = xc * lax.rsqrt(var + eps) * g_ref[...] + b_ref[...]
        xn_ref[...] = xn.astype(xn_ref.dtype)

    y = jnp.dot(xn_ref[...], w_ref[0],
                preferred_element_type=jnp.float32) + bias_ref[0]
    o_ref[0] = y.astype(o_ref.dtype)


def ln_qkv_heads_pallas(x2d, gamma, beta, w_heads, b_heads, *, eps=1e-5,
                        out_dtype=jnp.bfloat16):
    """out[j] = LayerNorm(x2d) @ w_heads[j] + b_heads[j]  (j over 3*H planes).
    Emits QKV directly in head-major (3H, M, Dh) layout so the per-layer XLA
    head-split transpose through HBM disappears; LN'd activations and the x
    tile stay resident across the 3H sweep."""
    M, K = x2d.shape
    J, K2, Dh = w_heads.shape
    assert K == K2
    tm = _pick_tile(M, _TM)
    return pl.pallas_call(
        functools.partial(_ln_qkv_heads_kernel, eps=eps),
        out_shape=jax.ShapeDtypeStruct((J, M, Dh), out_dtype),
        grid=(M // tm, J),
        in_specs=[
            pl.BlockSpec((tm, K), lambda i, j: (i, 0)),
            pl.BlockSpec((1, K), lambda i, j: (0, 0)),
            pl.BlockSpec((1, K), lambda i, j: (0, 0)),
            pl.BlockSpec((1, K, Dh), lambda i, j: (j, 0, 0)),
            pl.BlockSpec((1, 1, Dh), lambda i, j: (j, 0, 0)),
        ],
        out_specs=pl.BlockSpec((1, tm, Dh), lambda i, j: (j, i, 0)),
        scratch_shapes=[pltpu.VMEM((tm, K), jnp.bfloat16)],
        compiler_params=_cparams(("parallel", "arbitrary")),
    )(x2d, gamma.reshape(1, K), beta.reshape(1, K), w_heads, b_heads)


# ---------------------------------------------------------------------------
# Kernel 3: K-tiled Linear + bias + residual (f32 accumulator, bf16 residual)
# ---------------------------------------------------------------------------
def _linear_resid_kernel(x_ref, w_ref, b_ref, r_ref, o_ref, acc_ref):
    k = pl.program_id(2)

    @pl.when(k == 0)
    def _():
        acc_ref[...] = jnp.zeros_like(acc_ref)

    acc_ref[...] += jnp.dot(x_ref[...], w_ref[...],
                            preferred_element_type=jnp.float32)

    @pl.when(k == pl.num_programs(2) - 1)
    def _():
        o_ref[...] = (acc_ref[...] + b_ref[...]
                      + r_ref[...].astype(jnp.float32)).astype(o_ref.dtype)


def linear_residual_pallas(x2d, w, bias, residual, *, out_dtype=jnp.bfloat16):
    M, K = x2d.shape
    K2, N = w.shape
    assert K == K2
    tm, tn, tk = _pick_tile(M, _TM), _pick_tile(N, _TN), _pick_tile(K, _TK)
    return pl.pallas_call(
        _linear_resid_kernel,
        out_shape=jax.ShapeDtypeStruct((M, N), out_dtype),
        grid=(M // tm, N // tn, K // tk),
        in_specs=[
            pl.BlockSpec((tm, tk), lambda i, j, k: (i, k)),
            pl.BlockSpec((tk, tn), lambda i, j, k: (k, j)),
            pl.BlockSpec((1, tn), lambda i, j, k: (0, j)),
            pl.BlockSpec((tm, tn), lambda i, j, k: (i, j)),
        ],
        out_specs=pl.BlockSpec((tm, tn), lambda i, j, k: (i, j)),
        scratch_shapes=[pltpu.VMEM((tm, tn), jnp.float32)],
        compiler_params=_cparams(("parallel", "parallel", "arbitrary")),
    )(x2d, w, bias.reshape(1, N), residual)


# ---------------------------------------------------------------------------
# Kernel 4: attention output projection — all heads reduced in one grid step
# ---------------------------------------------------------------------------
def _head_proj_kernel(a_ref, w_ref, b_ref, r_ref, o_ref):
    acc = b_ref[...] + r_ref[...].astype(jnp.float32)
    for h in range(a_ref.shape[0]):           # unrolled: H dots per grid step
        acc = acc + jnp.dot(a_ref[h], w_ref[h],
                            preferred_element_type=jnp.float32)
    o_ref[...] = acc.astype(o_ref.dtype)


def head_projection_pallas(attn, w_o_heads, bias, residual, *,
                           out_dtype=jnp.bfloat16):
    """out = sum_h attn[h] @ w_o_heads[h] + bias + residual, consuming the
    head-major attention output directly (no HBM transpose); all heads are
    folded into a single grid step to avoid per-head step/DMA overhead."""
    H, M, Dh = attn.shape
    H2, Dh2, N = w_o_heads.shape
    assert H == H2 and Dh == Dh2
    tm, tn = _pick_tile(M, _TM), _pick_tile(N, _TN)
    return pl.pallas_call(
        _head_proj_kernel,
        out_shape=jax.ShapeDtypeStruct((M, N), out_dtype),
        grid=(M // tm, N // tn),
        in_specs=[
            pl.BlockSpec((H, tm, Dh), lambda i, j: (0, i, 0)),
            pl.BlockSpec((H, Dh, tn), lambda i, j: (0, 0, j)),
            pl.BlockSpec((1, tn), lambda i, j: (0, j)),
            pl.BlockSpec((tm, tn), lambda i, j: (i, j)),
        ],
        out_specs=pl.BlockSpec((tm, tn), lambda i, j: (i, j)),
        compiler_params=_cparams(("parallel", "parallel")),
    )(attn, w_o_heads, bias.reshape(1, N), residual)


# ---------------------------------------------------------------------------
# Kernel 5: flash-style causal attention on a lower-triangular (qi, kv) schedule
# ---------------------------------------------------------------------------
def _flash_attn_kernel(qi_map, kv_map, q_ref, k_ref, v_ref, o_ref,
                       m_sc, l_sc, acc_sc):
    step = pl.program_id(2)
    qi = qi_map[step]
    kv = kv_map[step]

    @pl.when(kv == 0)
    def _():
        m_sc[...] = jnp.full_like(m_sc, -jnp.inf)
        l_sc[...] = jnp.zeros_like(l_sc)
        acc_sc[...] = jnp.zeros_like(acc_sc)

    q = q_ref[0, 0]                 # (tq, Dh); 1/sqrt(Dh) folded into Q weights
    k = k_ref[0, 0]
    v = v_ref[0, 0]
    s = lax.dot_general(q, k, (((1,), (1,)), ((), ())),
                        preferred_element_type=jnp.float32)        # (tq, tk)

    def online_update(scores):
        m_prev = m_sc[...]
        m_new = jnp.maximum(m_prev, jnp.max(scores, axis=-1, keepdims=True))
        alpha = jnp.exp(m_prev - m_new)
        p = jnp.exp(scores - m_new)
        l_sc[...] = alpha * l_sc[...] + jnp.sum(p, axis=-1, keepdims=True)
        acc_sc[...] = alpha * acc_sc[...] + jnp.dot(
            p.astype(v.dtype), v, preferred_element_type=jnp.float32)
        m_sc[...] = m_new

    # Fast path: strictly-below-diagonal tiles need no mask at all.
    @pl.when(kv < qi)
    def _():
        online_update(s)

    # Diagonal tile: intra-tile causal mask; it is also the last kv step for
    # this query tile in the lower-triangular schedule, so finalize + write.
    @pl.when(kv == qi)
    def _():
        tq, tk = s.shape
        row = lax.broadcasted_iota(jnp.int32, (tq, tk), 0)
        col = lax.broadcasted_iota(jnp.int32, (tq, tk), 1)
        online_update(jnp.where(col <= row, s, jnp.float32(-1e30)))
        o_ref[0, 0] = (acc_sc[...] *
                       pl.reciprocal(l_sc[...], approx=True)).astype(o_ref.dtype)


def flash_attention_pallas(qkv_heads, n_head, batch, *, out_dtype=jnp.bfloat16):
    """Causal flash attention reading Q/K/V straight out of the head-major
    (3H, B, S, Dh) buffer.  The kv loop is flattened to a lower-triangular
    schedule via scalar prefetch, so fully-masked kv tiles are never visited
    or DMA'd, and only the diagonal tile pays for the causal mask."""
    J, B, S, Dh = qkv_heads.shape
    H = n_head
    assert J == 3 * H and B == batch
    t = _pick_tile(S, _ATTN_TILE)
    n = S // t

    # Lower-triangular (qi, kv) pairs, kv innermost: kv==0 opens each query
    # tile, kv==qi (diagonal) closes it.
    pairs = [(qi, kv) for qi in range(n) for kv in range(qi + 1)]
    qi_map = jnp.asarray(np.array([p[0] for p in pairs], np.int32))
    kv_map = jnp.asarray(np.array([p[1] for p in pairs], np.int32))
    n_steps = len(pairs)

    grid_spec = pltpu.PrefetchScalarGridSpec(
        num_scalar_prefetch=2,
        grid=(H, B, n_steps),
        in_specs=[
            pl.BlockSpec((1, 1, t, Dh),
                         lambda h, b, i, qi_r, kv_r: (h, b, qi_r[i], 0)),
            pl.BlockSpec((1, 1, t, Dh),
                         lambda h, b, i, qi_r, kv_r: (H + h, b, kv_r[i], 0)),
            pl.BlockSpec((1, 1, t, Dh),
                         lambda h, b, i, qi_r, kv_r: (2 * H + h, b, kv_r[i], 0)),
        ],
        out_specs=pl.BlockSpec((1, 1, t, Dh),
                               lambda h, b, i, qi_r, kv_r: (h, b, qi_r[i], 0)),
        scratch_shapes=[
            pltpu.VMEM((t, 1), jnp.float32),
            pltpu.VMEM((t, 1), jnp.float32),
            pltpu.VMEM((t, Dh), jnp.float32),
        ],
    )
    return pl.pallas_call(
        _flash_attn_kernel,
        out_shape=jax.ShapeDtypeStruct((H, B, S, Dh), out_dtype),
        grid_spec=grid_spec,
        compiler_params=_cparams(("parallel", "parallel", "arbitrary")),
    )(qi_map, kv_map, qkv_heads, qkv_heads, qkv_heads)


# ---------------------------------------------------------------------------
# Parameter construction (deterministic, synthetic; bf16 weights, f32 LN/bias)
# ---------------------------------------------------------------------------
def init_params(key, vocab_size, max_len, n_layers, d_model, n_head):
    d_ff = 4 * d_model
    d_head = d_model // n_head

    def dense(k, fan_in, fan_out):
        kw, kb = jax.random.split(k)
        lim = 1.0 / math.sqrt(fan_in)
        w = jax.random.uniform(kw, (fan_in, fan_out), jnp.float32, -lim, lim)
        b = jax.random.uniform(kb, (fan_out,), jnp.float32, -lim, lim)
        return w, b

    keys = jax.random.split(key, 3 + n_layers)
    params = {
        "tok_emb": 0.02 * jax.random.normal(keys[0], (vocab_size, d_model), jnp.float32),
        "pos_emb": 0.02 * jax.random.normal(keys[1], (max_len, d_model), jnp.float32),
        "layers": [],
    }
    for li in range(n_layers):
        lk = jax.random.split(keys[2 + li], 4)
        w_qkv, b_qkv = dense(lk[0], d_model, 3 * d_model)
        # Head-major QKV weights (3H, D, Dh); the 1/sqrt(Dh) softmax scale is
        # folded into the Q projection (weights AND bias) at zero runtime cost.
        scale = 1.0 / math.sqrt(d_head)
        w_qkv = w_qkv.reshape(d_model, 3 * n_head, d_head).transpose(1, 0, 2)
        b_qkv = b_qkv.reshape(3 * n_head, 1, d_head)
        q_scale = jnp.concatenate(
            [jnp.full((n_head,), scale, jnp.float32),
             jnp.ones((2 * n_head,), jnp.float32)]).reshape(3 * n_head, 1, 1)
        w_qkv = w_qkv * q_scale
        b_qkv = b_qkv * q_scale

        w_o, b_o = dense(lk[1], d_model, d_model)
        w_o = w_o.reshape(n_head, d_head, d_model)       # per-head out-proj rows
        w_f1, b_f1 = dense(lk[2], d_model, d_ff)
        w_f2, b_f2 = dense(lk[3], d_ff, d_model)
        params["layers"].append({
            "ln1_g": jnp.ones((d_model,), jnp.float32),
            "ln1_b": jnp.zeros((d_model,), jnp.float32),
            "w_qkv": w_qkv.astype(jnp.bfloat16), "b_qkv": b_qkv,
            "w_o": w_o.astype(jnp.bfloat16), "b_o": b_o,
            "ln2_g": jnp.ones((d_model,), jnp.float32),
            "ln2_b": jnp.zeros((d_model,), jnp.float32),
            "w_f1": w_f1.astype(jnp.bfloat16), "b_f1": b_f1,
            "w_f2": w_f2.astype(jnp.bfloat16), "b_f2": b_f2,
        })
    params["lnf_g"] = jnp.ones((d_model,), jnp.float32)
    params["lnf_b"] = jnp.zeros((d_model,), jnp.float32)
    # lm_head = nn.Linear(d_model, vocab_size); stored as (d_model, vocab).
    lm_w, lm_b = dense(keys[-1], d_model, vocab_size)
    params["lm_w"], params["lm_b"] = lm_w.astype(jnp.bfloat16), lm_b
    return params


# ---------------------------------------------------------------------------
# Forward pass
# ---------------------------------------------------------------------------
def init_state():
    return None  # abstract `cls` state; passed through untouched.


def transformer_lm_forward(params, tokens, state, *, n_head):
    B, S = tokens.shape
    D = params["tok_emb"].shape[1]
    Dh = D // n_head

    # Token + position embedding (gather stays in XLA); bf16 residual stream.
    x = jnp.take(params["tok_emb"], tokens, axis=0) + params["pos_emb"][:S][None]
    x2d = x.reshape(B * S, D).astype(jnp.bfloat16)

    for lp in params["layers"]:
        # --- causal self-attention (pre-LN fused into QKV; head-major, no transposes)
        qkv = ln_qkv_heads_pallas(x2d, lp["ln1_g"], lp["ln1_b"],
                                  lp["w_qkv"], lp["b_qkv"])          # (3H, B*S, Dh)
        qkv = qkv.reshape(3 * n_head, B, S, Dh)                      # free reshape
        attn = flash_attention_pallas(qkv, n_head, B)                # (H, B, S, Dh)
        attn = attn.reshape(n_head, B * S, Dh)                       # free reshape
        x2d = head_projection_pallas(attn, lp["w_o"], lp["b_o"], x2d)

        # --- GELU FFN (pre-LN fused into FFN1; residual fused into FFN2)
        h = ln_linear_pallas(x2d, lp["ln2_g"], lp["ln2_b"],
                             lp["w_f1"], lp["b_f1"], activation="gelu")
        x2d = linear_residual_pallas(h, lp["w_f2"], lp["b_f2"], x2d)

    # Final LayerNorm fused into the lm_head matmul; the LN'd activations stay
    # resident in VMEM scratch across the whole vocab sweep.
    logits = ln_linear_pallas(x2d, params["lnf_g"], params["lnf_b"],
                              params["lm_w"], params["lm_b"],
                              out_dtype=jnp.float32)                 # [B*S, V]
    V = params["lm_w"].shape[1]
    return logits.reshape(B, S, V), state


# ---------------------------------------------------------------------------
if __name__ == "__main__":
    vocab_size, max_len, n_layers, d_model, n_head = 64, 16, 2, 32, 4
    B, S = 2, 8

    key = jax.random.PRNGKey(0)
    pkey, tkey = jax.random.split(key)
    params = init_params(pkey, vocab_size, max_len, n_layers, d_model, n_head)
    tokens = jax.random.randint(tkey, (B, S), 0, vocab_size, dtype=jnp.int32)

    state = init_state()
    fwd = jax.jit(functools.partial(transformer_lm_forward, n_head=n_head))
    logits, state = fwd(params, tokens, state)
    logits = jax.block_until_ready(logits)

    assert logits.shape == (B, S, vocab_size)
    assert logits.dtype == jnp.float32
    assert bool(jnp.all(jnp.isfinite(logits)))
    print("KERNEL_OK")
</pallas_src>

<mosaic_0001>
module attributes {stable_mosaic.version = 11 : i64} {
  func.func @_ln_qkv_heads_kernel(%arg0: i32, %arg1: i32, %arg2: memref<16x32xbf16, #tpu.memory_space<vmem>>, %arg3: memref<1x32xf32, #tpu.memory_space<vmem>>, %arg4: memref<1x32xf32, #tpu.memory_space<vmem>>, %arg5: memref<1x32x8xbf16, #tpu.memory_space<vmem>>, %arg6: memref<1x1x8xf32, #tpu.memory_space<vmem>>, %arg7: memref<1x16x8xbf16, #tpu.memory_space<vmem>>, %arg8: memref<16x32xbf16, #tpu.memory_space<vmem>>) attributes {dimension_semantics = [#tpu.dimension_semantics<parallel>, #tpu.dimension_semantics<arbitrary>], iteration_bounds = array<i64: 1, 12>, scalar_prefetch = 0 : i64, scratch_operands = 1 : i64, tpu.core_type = #tpu.core_type<tc>, window_params = [{transform_indices = @transform_0, window_bounds = array<i64: 16, 32>}, {pipeline_mode = #tpu.pipeline_mode<synchronous>, transform_indices = @transform_1, window_bounds = array<i64: 1, 32>}, {pipeline_mode = #tpu.pipeline_mode<synchronous>, transform_indices = @transform_2, window_bounds = array<i64: 1, 32>}, {transform_indices = @transform_3, window_bounds = array<i64: 1, 32, 8>}, {transform_indices = @transform_4, window_bounds = array<i64: 1, 1, 8>}, {transform_indices = @transform_5, window_bounds = array<i64: 1, 16, 8>}]} {
    %c0_i32 = arith.constant 0 : i32
    %0 = arith.cmpi eq, %arg1, %c0_i32 : i32
    %1 = arith.extui %0 : i1 to i32
    %c0_i32_0 = arith.constant 0 : i32
    %2 = arith.cmpi ne, %1, %c0_i32_0 : i32
    scf.if %2 {
      %c0_11 = arith.constant 0 : index
      %c0_12 = arith.constant 0 : index
      %15 = vector.load %arg2[%c0_11, %c0_12] : memref<16x32xbf16, #tpu.memory_space<vmem>>, vector<16x32xbf16>
      %16 = arith.extf %15 : vector<16x32xbf16> to vector<16x32xf32>
      %cst_13 = arith.constant dense<0.000000e+00> : vector<16xf32>
      %17 = vector.multi_reduction <add>, %16, %cst_13 [1] : vector<16x32xf32> to vector<16xf32>
      %18 = vector.shape_cast %17 : vector<16xf32> to vector<16x1xf32>
      %cst_14 = arith.constant 3.200000e+01 : f32
      %19 = vector.broadcast %cst_14 : f32 to vector<16x1xf32>
      %20 = arith.divf %18, %19 : vector<16x1xf32>
      %21 = vector.broadcast %20 : vector<16x1xf32> to vector<16x32xf32>
      %22 = arith.subf %16, %21 : vector<16x32xf32>
      %23 = arith.mulf %22, %22 : vector<16x32xf32>
      %cst_15 = arith.constant dense<0.000000e+00> : vector<16xf32>
      %24 = vector.multi_reduction <add>, %23, %cst_15 [1] : vector<16x32xf32> to vector<16xf32>
      %25 = vector.shape_cast %24 : vector<16xf32> to vector<16x1xf32>
      %cst_16 = arith.constant 3.200000e+01 : f32
      %26 = vector.broadcast %cst_16 : f32 to vector<16x1xf32>
      %27 = arith.divf %25, %26 : vector<16x1xf32>
      %cst_17 = arith.constant 9.99999974E-6 : f32
      %28 = vector.broadcast %cst_17 : f32 to vector<16x1xf32>
      %29 = arith.addf %27, %28 : vector<16x1xf32>
      %30 = math.rsqrt %29 : vector<16x1xf32>
      %31 = vector.broadcast %30 : vector<16x1xf32> to vector<16x32xf32>
      %32 = arith.mulf %22, %31 : vector<16x32xf32>
      %c0_18 = arith.constant 0 : index
      %c0_19 = arith.constant 0 : index
      %33 = vector.load %arg3[%c0_18, %c0_19] : memref<1x32xf32, #tpu.memory_space<vmem>>, vector<1x32xf32>
      %34 = vector.broadcast %33 : vector<1x32xf32> to vector<16x32xf32>
      %35 = arith.mulf %32, %34 : vector<16x32xf32>
      %c0_20 = arith.constant 0 : index
      %c0_21 = arith.constant 0 : index
      %36 = vector.load %arg4[%c0_20, %c0_21] : memref<1x32xf32, #tpu.memory_space<vmem>>, vector<1x32xf32>
      %37 = vector.broadcast %36 : vector<1x32xf32> to vector<16x32xf32>
      %38 = arith.addf %35, %37 : vector<16x32xf32>
      %39 = arith.truncf %38 : vector<16x32xf32> to vector<16x32xbf16>
      %c0_22 = arith.constant 0 : index
      %c0_23 = arith.constant 0 : index
      %40 = vector.load %arg8[%c0_22, %c0_23] : memref<16x32xbf16, #tpu.memory_space<vmem>>, vector<16x32xbf16>
      tpu.vector_store %arg8[%c0_22, %c0_23], %39 {strides = array<i32>} : memref<16x32xbf16, #tpu.memory_space<vmem>>, vector<16x32xbf16>,
    } else {
    }
    %c0 = arith.constant 0 : index
    %c0_1 = arith.constant 0 : index
    %3 = vector.load %arg8[%c0, %c0_1] : memref<16x32xbf16, #tpu.memory_space<vmem>>, vector<16x32xbf16>
    %c0_2 = arith.constant 0 : index
    %c0_3 = arith.constant 0 : index
    %c0_4 = arith.constant 0 : index
    %4 = vector.load %arg5[%c0_2, %c0_3, %c0_4] : memref<1x32x8xbf16, #tpu.memory_space<vmem>>, vector<1x32x8xbf16>
    %5 = vector.shape_cast %4 : vector<1x32x8xbf16> to vector<32x8xbf16>
    %cst = arith.constant dense<0.000000e+00> : vector<16x8xf32>
    %6 = tpu.matmul %3, %5, %cst {dimension_numbers = #tpu.dot_dimension_numbers<[1], [0], [0], [1], [0, 0, 1, 1], [], []>} : vector<16x32xbf16>, vector<32x8xbf16>, vector<16x8xf32> -> vector<16x8xf32>
    %c0_5 = arith.constant 0 : index
    %c0_6 = arith.constant 0 : index
    %c0_7 = arith.constant 0 : index
    %7 = vector.load %arg6[%c0_5, %c0_6, %c0_7] : memref<1x1x8xf32, #tpu.memory_space<vmem>>, vector<1x1x8xf32>
    %8 = vector.shape_cast %7 : vector<1x1x8xf32> to vector<1x8xf32>
    %9 = vector.broadcast %8 : vector<1x8xf32> to vector<16x8xf32>
    %10 = arith.addf %6, %9 : vector<16x8xf32>
    %11 = arith.truncf %10 : vector<16x8xf32> to vector<16x8xbf16>
    %c0_8 = arith.constant 0 : index
    %c0_9 = arith.constant 0 : index
    %c0_10 = arith.constant 0 : index
    %12 = vector.load %arg7[%c0_8, %c0_9, %c0_10] : memref<1x16x8xbf16, #tpu.memory_space<vmem>>, vector<1x16x8xbf16>
    %13 = vector.shape_cast %12 : vector<1x16x8xbf16> to vector<16x8xbf16>
    %14 = vector.shape_cast %11 : vector<16x8xbf16> to vector<1x16x8xbf16>
    tpu.vector_store %arg7[%c0_8, %c0_9, %c0_10], %14 {strides = array<i32>} : memref<1x16x8xbf16, #tpu.memory_space<vmem>>, vector<1x16x8xbf16>,
    return
  }
  func.func @transform_0(%arg0: i32, %arg1: i32) -> (i32, i32) {
    %c0_i32 = arith.constant 0 : i32
    %c0_i32_0 = arith.constant 0 : i32
    return %arg0, %c0_i32 : i32, i32
  }
  func.func @transform_1(%arg0: i32, %arg1: i32) -> (i32, i32) {
    %c0_i32 = arith.constant 0 : i32
    %c0_i32_0 = arith.constant 0 : i32
    %c0_i32_1 = arith.constant 0 : i32
    return %c0_i32, %c0_i32_0 : i32, i32
  }
  func.func @transform_2(%arg0: i32, %arg1: i32) -> (i32, i32) {
    %c0_i32 = arith.constant 0 : i32
    %c0_i32_0 = arith.constant 0 : i32
    %c0_i32_1 = arith.constant 0 : i32
    return %c0_i32, %c0_i32_0 : i32, i32
  }
  func.func @transform_3(%arg0: i32, %arg1: i32) -> (i32, i32, i32) {
    %c0_i32 = arith.constant 0 : i32
    %c0_i32_0 = arith.constant 0 : i32
    %c0_i32_1 = arith.constant 0 : i32
    return %arg1, %c0_i32, %c0_i32_0 : i32, i32, i32
  }
  func.func @transform_4(%arg0: i32, %arg1: i32) -> (i32, i32, i32) {
    %c0_i32 = arith.constant 0 : i32
    %c0_i32_0 = arith.constant 0 : i32
    %c0_i32_1 = arith.constant 0 : i32
    return %arg1, %c0_i32, %c0_i32_0 : i32, i32, i32
  }
  func.func @transform_5(%arg0: i32, %arg1: i32) -> (i32, i32, i32) {
    %c0_i32 = arith.constant 0 : i32
    %c0_i32_0 = arith.constant 0 : i32
    return %arg1, %arg0, %c0_i32 : i32, i32, i32
  }
}

module attributes {stable_mosaic.version = 11 : i64} {
  func.func @_flash_attn_kernel(%arg0: i32, %arg1: i32, %arg2: i32, %arg3: memref<1xi32, #tpu.memory_space<smem>>, %arg4: memref<1xi32, #tpu.memory_space<smem>>, %arg5: memref<1x1x8x8xbf16, #tpu.memory_space<vmem>>, %arg6: memref<1x1x8x8xbf16, #tpu.memory_space<vmem>>, %arg7: memref<1x1x8x8xbf16, #tpu.memory_space<vmem>>, %arg8: memref<1x1x8x8xbf16, #tpu.memory_space<vmem>>, %arg9: memref<8x1xf32, #tpu.memory_space<vmem>>, %arg10: memref<8x1xf32, #tpu.memory_space<vmem>>, %arg11: memref<8x8xf32, #tpu.memory_space<vmem>>) attributes {dimension_semantics = [#tpu.dimension_semantics<parallel>, #tpu.dimension_semantics<parallel>, #tpu.dimension_semantics<arbitrary>], iteration_bounds = array<i64: 4, 2, 1>, scalar_prefetch = 2 : i64, scratch_operands = 3 : i64, tpu.core_type = #tpu.core_type<tc>, window_params = [{transform_indices = @transform_0, window_bounds = array<i64: 1, 1, 8, 8>}, {transform_indices = @transform_1, window_bounds = array<i64: 1, 1, 8, 8>}, {transform_indices = @transform_2, window_bounds = array<i64: 1, 1, 8, 8>}, {transform_indices = @transform_3, window_bounds = array<i64: 1, 1, 8, 8>}]} {
    %0 = arith.index_cast %arg2 : i32 to index
    %1 = memref.load %arg3[%0] : memref<1xi32, #tpu.memory_space<smem>>
    %2 = arith.index_cast %arg2 : i32 to index
    %3 = memref.load %arg4[%2] : memref<1xi32, #tpu.memory_space<smem>>
    %c0_i32 = arith.constant 0 : i32
    %4 = arith.cmpi eq, %3, %c0_i32 : i32
    %5 = arith.extui %4 : i1 to i32
    %c0_i32_0 = arith.constant 0 : i32
    %6 = arith.cmpi ne, %5, %c0_i32_0 : i32
    scf.if %6 {
      %cst_14 = arith.constant 0xFF800000 : f32
      %20 = vector.broadcast %cst_14 : f32 to vector<8x1xf32>
      %c0_15 = arith.constant 0 : index
      %c0_16 = arith.constant 0 : index
      %21 = vector.load %arg9[%c0_15, %c0_16] : memref<8x1xf32, #tpu.memory_space<vmem>>, vector<8x1xf32>
      tpu.vector_store %arg9[%c0_15, %c0_16], %20 {strides = array<i32>} : memref<8x1xf32, #tpu.memory_space<vmem>>, vector<8x1xf32>,
      %cst_17 = arith.constant 0.000000e+00 : f32
      %22 = vector.broadcast %cst_17 : f32 to vector<8x1xf32>
      %c0_18 = arith.constant 0 : index
      %c0_19 = arith.constant 0 : index
      %23 = vector.load %arg10[%c0_18, %c0_19] : memref<8x1xf32, #tpu.memory_space<vmem>>, vector<8x1xf32>
      tpu.vector_store %arg10[%c0_18, %c0_19], %22 {strides = array<i32>} : memref<8x1xf32, #tpu.memory_space<vmem>>, vector<8x1xf32>,
      %cst_20 = arith.constant 0.000000e+00 : f32
      %24 = vector.broadcast %cst_20 : f32 to vector<8x8xf32>
      %c0_21 = arith.constant 0 : index
      %c0_22 = arith.constant 0 : index
      %25 = vector.load %arg11[%c0_21, %c0_22] : memref<8x8xf32, #tpu.memory_space<vmem>>, vector<8x8xf32>
      tpu.vector_store %arg11[%c0_21, %c0_22], %24 {strides = array<i32>} : memref<8x8xf32, #tpu.memory_space<vmem>>, vector<8x8xf32>,
    } else {
    }
    %c0 = arith.constant 0 : index
    %c0_1 = arith.constant 0 : index
    %c0_2 = arith.constant 0 : index
    %c0_3 = arith.constant 0 : index
    %7 = vector.load %arg5[%c0, %c0_1, %c0_2, %c0_3] : memref<1x1x8x8xbf16, #tpu.memory_space<vmem>>, vector<1x1x8x8xbf16>
    %8 = vector.shape_cast %7 : vector<1x1x8x8xbf16> to vector<8x8xbf16>
    %c0_4 = arith.constant 0 : index
    %c0_5 = arith.constant 0 : index
    %c0_6 = arith.constant 0 : index
    %c0_7 = arith.constant 0 : index
    %9 = vector.load %arg6[%c0_4, %c0_5, %c0_6, %c0_7] : memref<1x1x8x8xbf16, #tpu.memory_space<vmem>>, vector<1x1x8x8xbf16>
    %10 = vector.shape_cast %9 : vector<1x1x8x8xbf16> to vector<8x8xbf16>
    %c0_8 = arith.constant 0 : index
    %c0_9 = arith.constant 0 : index
    %c0_10 = arith.constant 0 : index
    %c0_11 = arith.constant 0 : index
    %11 = vector.load %arg7[%c0_8, %c0_9, %c0_10, %c0_11] : memref<1x1x8x8xbf16, #tpu.memory_space<vmem>>, vector<1x1x8x8xbf16>
    %12 = vector.shape_cast %11 : vector<1x1x8x8xbf16> to vector<8x8xbf16>
    %cst = arith.constant dense<0.000000e+00> : vector<8x8xf32>
    %13 = tpu.matmul %8, %10, %cst {dimension_numbers = #tpu.dot_dimension_numbers<[1], [1], [0], [0], [0, 0, 1, 0], [], []>} : vector<8x8xbf16>, vector<8x8xbf16>, vector<8x8xf32> -> vector<8x8xf32>
    %14 = arith.cmpi slt, %3, %1 : i32
    %15 = arith.extui %14 : i1 to i32
    %c0_i32_12 = arith.constant 0 : i32
    %16 = arith.cmpi ne, %15, %c0_i32_12 : i32
    scf.if %16 {
      %c0_14 = arith.constant 0 : index
      %c0_15 = arith.constant 0 : index
      %20 = vector.load %arg9[%c0_14, %c0_15] : memref<8x1xf32, #tpu.memory_space<vmem>>, vector<8x1xf32>
      %cst_16 = arith.constant dense<0xFF800000> : vector<8xf32>
      %21 = vector.multi_reduction <maximumf>, %13, %cst_16 [1] : vector<8x8xf32> to vector<8xf32>
      %22 = vector.shape_cast %21 : vector<8xf32> to vector<8x1xf32>
      %23 = arith.maximumf %20, %22 : vector<8x1xf32>
      %24 = arith.subf %20, %23 : vector<8x1xf32>
      %25 = math.exp %24 : vector<8x1xf32>
      %26 = vector.broadcast %23 : vector<8x1xf32> to vector<8x8xf32>
      %27 = arith.subf %13, %26 : vector<8x8xf32>
      %28 = math.exp %27 : vector<8x8xf32>
      %c0_17 = arith.constant 0 : index
      %c0_18 = arith.constant 0 : index
      %29 = vector.load %arg10[%c0_17, %c0_18] : memref<8x1xf32, #tpu.memory_space<vmem>>, vector<8x1xf32>
      %30 = arith.mulf %25, %29 : vector<8x1xf32>
      %cst_19 = arith.constant dense<0.000000e+00> : vector<8xf32>
      %31 = vector.multi_reduction <add>, %28, %cst_19 [1] : vector<8x8xf32> to vector<8xf32>
      %32 = vector.shape_cast %31 : vector<8xf32> to vector<8x1xf32>
      %33 = arith.addf %30, %32 : vector<8x1xf32>
      %c0_20 = arith.constant 0 : index
      %c0_21 = arith.constant 0 : index
      %34 = vector.load %arg10[%c0_20, %c0_21] : memref<8x1xf32, #tpu.memory_space<vmem>>, vector<8x1xf32>
      tpu.vector_store %arg10[%c0_20, %c0_21], %33 {strides = array<i32>} : memref<8x1xf32, #tpu.memory_space<vmem>>, vector<8x1xf32>,
      %c0_22 = arith.constant 0 : index
      %c0_23 = arith.constant 0 : index
      %35 = vector.load %arg11[%c0_22, %c0_23] : memref<8x8xf32, #tpu.memory_space<vmem>>, vector<8x8xf32>
      %36 = vector.broadcast %25 : vector<8x1xf32> to vector<8x8xf32>
      %37 = arith.mulf %36, %35 : vector<8x8xf32>
      %38 = arith.truncf %28 : vector<8x8xf32> to vector<8x8xbf16>
      %cst_24 = arith.constant dense<0.000000e+00> : vector<8x8xf32>
      %39 = tpu.matmul %38, %12, %cst_24 {dimension_numbers = #tpu.dot_dimension_numbers<[1], [0], [0], [1], [0, 0, 1, 1], [], []>} : vector<8x8xbf16>, vector<8x8xbf16>, vector<8x8xf32> -> vector<8x8xf32>
      %40 = arith.addf %37, %39 : vector<8x8xf32>
      %c0_25 = arith.constant 0 : index
      %c0_26 = arith.constant 0 : index
      %41 = vector.load %arg11[%c0_25, %c0_26] : memref<8x8xf32, #tpu.memory_space<vmem>>, vector<8x8xf32>
      tpu.vector_store %arg11[%c0_25, %c0_26], %40 {strides = array<i32>} : memref<8x8xf32, #tpu.memory_space<vmem>>, vector<8x8xf32>,
      %c0_27 = arith.constant 0 : index
      %c0_28 = arith.constant 0 : index
      %42 = vector.load %arg9[%c0_27, %c0_28] : memref<8x1xf32, #tpu.memory_space<vmem>>, vector<8x1xf32>
      tpu.vector_store %arg9[%c0_27, %c0_28], %23 {strides = array<i32>} : memref<8x1xf32, #tpu.memory_space<vmem>>, vector<8x1xf32>,
    } else {
    }
    %17 = arith.cmpi eq, %3, %1 : i32
    %18 = arith.extui %17 : i1 to i32
    %c0_i32_13 = arith.constant 0 : i32
    %19 = arith.cmpi ne, %18, %c0_i32_13 : i32
    scf.if %19 {
      %20 = tpu.iota {dimensions = array<i32: 0>} : vector<8x8xi32>
      %21 = tpu.iota {dimensions = array<i32: 1>} : vector<8x8xi32>
      %22 = arith.cmpi sle, %21, %20 : vector<8x8xi32>
      %cst_14 = arith.constant -1.000000e+30 : f32
      %23 = vector.broadcast %cst_14 : f32 to vector<8x8xf32>
      %24 = arith.select %22, %13, %23 : vector<8x8xi1>, vector<8x8xf32>
      %c0_15 = arith.constant 0 : index
      %c0_16 = arith.constant 0 : index
      %25 = vector.load %arg9[%c0_15, %c0_16] : memref<8x1xf32, #tpu.memory_space<vmem>>, vector<8x1xf32>
      %cst_17 = arith.constant dense<0xFF800000> : vector<8xf32>
      %26 = vector.multi_reduction <maximumf>, %24, %cst_17 [1] : vector<8x8xf32> to vector<8xf32>
      %27 = vector.shape_cast %26 : vector<8xf32> to vector<8x1xf32>
      %28 = arith.maximumf %25, %27 : vector<8x1xf32>
      %29 = arith.subf %25, %28 : vector<8x1xf32>
      %30 = math.exp %29 : vector<8x1xf32>
      %31 = vector.broadcast %28 : vector<8x1xf32> to vector<8x8xf32>
      %32 = arith.subf %24, %31 : vector<8x8xf32>
      %33 = math.exp %32 : vector<8x8xf32>
      %c0_18 = arith.constant 0 : index
      %c0_19 = arith.constant 0 : index
      %34 = vector.load %arg10[%c0_18, %c0_19] : memref<8x1xf32, #tpu.memory_space<vmem>>, vector<8x1xf32>
      %35 = arith.mulf %30, %34 : vector<8x1xf32>
      %cst_20 = arith.constant dense<0.000000e+00> : vector<8xf32>
      %36 = vector.multi_reduction <add>, %33, %cst_20 [1] : vector<8x8xf32> to vector<8xf32>
      %37 = vector.shape_cast %36 : vector<8xf32> to vector<8x1xf32>
      %38 = arith.addf %35, %37 : vector<8x1xf32>
      %c0_21 = arith.constant 0 : index
      %c0_22 = arith.constant 0 : index
      %39 = vector.load %arg10[%c0_21, %c0_22] : memref<8x1xf32, #tpu.memory_space<vmem>>, vector<8x1xf32>
      tpu.vector_store %arg10[%c0_21, %c0_22], %38 {strides = array<i32>} : memref<8x1xf32, #tpu.memory_space<vmem>>, vector<8x1xf32>,
      %c0_23 = arith.constant 0 : index
      %c0_24 = arith.constant 0 : index
      %40 = vector.load %arg11[%c0_23, %c0_24] : memref<8x8xf32, #tpu.memory_space<vmem>>, vector<8x8xf32>
      %41 = vector.broadcast %30 : vector<8x1xf32> to vector<8x8xf32>
      %42 = arith.mulf %41, %40 : vector<8x8xf32>
      %43 = arith.truncf %33 : vector<8x8xf32> to vector<8x8xbf16>
      %cst_25 = arith.constant dense<0.000000e+00> : vector<8x8xf32>
      %44 = tpu.matmul %43, %12, %cst_25 {dimension_numbers = #tpu.dot_dimension_numbers<[1], [0], [0], [1], [0, 0, 1, 1], [], []>} : vector<8x8xbf16>, vector<8x8xbf16>, vector<8x8xf32> -> vector<8x8xf32>
      %45 = arith.addf %42, %44 : vector<8x8xf32>
      %c0_26 = arith.constant 0 : index
      %c0_27 = arith.constant 0 : index
      %46 = vector.load %arg11[%c0_26, %c0_27] : memref<8x8xf32, #tpu.memory_space<vmem>>, vector<8x8xf32>
      tpu.vector_store %arg11[%c0_26, %c0_27], %45 {strides = array<i32>} : memref<8x8xf32, #tpu.memory_space<vmem>>, vector<8x8xf32>,
      %c0_28 = arith.constant 0 : index
      %c0_29 = arith.constant 0 : index
      %47 = vector.load %arg9[%c0_28, %c0_29] : memref<8x1xf32, #tpu.memory_space<vmem>>, vector<8x1xf32>
      tpu.vector_store %arg9[%c0_28, %c0_29], %28 {strides = array<i32>} : memref<8x1xf32, #tpu.memory_space<vmem>>, vector<8x1xf32>,
      %c0_30 = arith.constant 0 : index
      %c0_31 = arith.constant 0 : index
      %48 = vector.load %arg11[%c0_30, %c0_31] : memref<8x8xf32, #tpu.memory_space<vmem>>, vector<8x8xf32>
      %c0_32 = arith.constant 0 : index
      %c0_33 = arith.constant 0 : index
      %49 = vector.load %arg10[%c0_32, %c0_33] : memref<8x1xf32, #tpu.memory_space<vmem>>, vector<8x1xf32>
      %50 = tpu.reciprocal %49 {approx = true} : vector<8x1xf32> -> vector<8x1xf32>
      %51 = vector.broadcast %50 : vector<8x1xf32> to vector<8x8xf32>
      %52 = arith.mulf %48, %51 : vector<8x8xf32>
      %53 = arith.truncf %52 : vector<8x8xf32> to vector<8x8xbf16>
      %c0_34 = arith.constant 0 : index
      %c0_35 = arith.constant 0 : index
      %c0_36 = arith.constant 0 : index
      %c0_37 = arith.constant 0 : index
      %54 = vector.load %arg8[%c0_34, %c0_35, %c0_36, %c0_37] : memref<1x1x8x8xbf16, #tpu.memory_space<vmem>>, vector<1x1x8x8xbf16>
      %55 = vector.shape_cast %54 : vector<1x1x8x8xbf16> to vector<8x8xbf16>
      %56 = vector.shape_cast %53 : vector<8x8xbf16> to vector<1x1x8x8xbf16>
      tpu.vector_store %arg8[%c0_34, %c0_35, %c0_36, %c0_37], %56 {strides = array<i32>} : memref<1x1x8x8xbf16, #tpu.memory_space<vmem>>, vector<1x1x8x8xbf16>,
    } else {
    }
    return
  }
  func.func @transform_0(%arg0: i32, %arg1: i32, %arg2: i32, %arg3: memref<1xi32, #tpu.memory_space<smem>>, %arg4: memref<1xi32, #tpu.memory_space<smem>>) -> (i32, i32, i32, i32) {
    %0 = arith.index_cast %arg2 : i32 to index
    %1 = memref.load %arg3[%0] : memref<1xi32, #tpu.memory_space<smem>>
    %c0_i32 = arith.constant 0 : i32
    %c0_i32_0 = arith.constant 0 : i32
    return %arg0, %arg1, %1, %c0_i32 : i32, i32, i32, i32
  }
  func.func @transform_1(%arg0: i32, %arg1: i32, %arg2: i32, %arg3: memref<1xi32, #tpu.memory_space<smem>>, %arg4: memref<1xi32, #tpu.memory_space<smem>>) -> (i32, i32, i32, i32) {
    %c4_i32 = arith.constant 4 : i32
    %0 = arith.addi %c4_i32, %arg0 : i32
    %1 = arith.index_cast %arg2 : i32 to index
    %2 = memref.load %arg4[%1] : memref<1xi32, #tpu.memory_space<smem>>
    %c0_i32 = arith.constant 0 : i32
    %c0_i32_0 = arith.constant 0 : i32
    return %0, %arg1, %2, %c0_i32 : i32, i32, i32, i32
  }
  func.func @transform_2(%arg0: i32, %arg1: i32, %arg2: i32, %arg3: memref<1xi32, #tpu.memory_space<smem>>, %arg4: memref<1xi32, #tpu.memory_space<smem>>) -> (i32, i32, i32, i32) {
    %c8_i32 = arith.constant 8 : i32
    %0 = arith.addi %c8_i32, %arg0 : i32
    %1 = arith.index_cast %arg2 : i32 to index
    %2 = memref.load %arg4[%1] : memref<1xi32, #tpu.memory_space<smem>>
    %c0_i32 = arith.constant 0 : i32
    %c0_i32_0 = arith.constant 0 : i32
    return %0, %arg1, %2, %c0_i32 : i32, i32, i32, i32
  }
  func.func @transform_3(%arg0: i32, %arg1: i32, %arg2: i32, %arg3: memref<1xi32, #tpu.memory_space<smem>>, %arg4: memref<1xi32, #tpu.memory_space<smem>>) -> (i32, i32, i32, i32) {
    %0 = arith.index_cast %arg2 : i32 to index
    %1 = memref.load %arg3[%0] : memref<1xi32, #tpu.memory_space<smem>>
    %c0_i32 = arith.constant 0 : i32
    %c0_i32_0 = arith.constant 0 : i32
    return %arg0, %arg1, %1, %c0_i32 : i32, i32, i32, i32
  }
}

module attributes {stable_mosaic.version = 11 : i64} {
  func.func @_ln_linear_kernel(%arg0: i32, %arg1: i32, %arg2: memref<16x32xbf16, #tpu.memory_space<vmem>>, %arg3: memref<1x32xf32, #tpu.memory_space<vmem>>, %arg4: memref<1x32xf32, #tpu.memory_space<vmem>>, %arg5: memref<32x128xbf16, #tpu.memory_space<vmem>>, %arg6: memref<1x128xf32, #tpu.memory_space<vmem>>, %arg7: memref<16x128xbf16, #tpu.memory_space<vmem>>, %arg8: memref<16x32xbf16, #tpu.memory_space<vmem>>) attributes {dimension_semantics = [#tpu.dimension_semantics<parallel>, #tpu.dimension_semantics<arbitrary>], iteration_bounds = array<i64: 1, 1>, scalar_prefetch = 0 : i64, scratch_operands = 1 : i64, tpu.core_type = #tpu.core_type<tc>, window_params = [{transform_indices = @transform_0, window_bounds = array<i64: 16, 32>}, {pipeline_mode = #tpu.pipeline_mode<synchronous>, transform_indices = @transform_1, window_bounds = array<i64: 1, 32>}, {pipeline_mode = #tpu.pipeline_mode<synchronous>, transform_indices = @transform_2, window_bounds = array<i64: 1, 32>}, {transform_indices = @transform_3, window_bounds = array<i64: 32, 128>}, {transform_indices = @transform_4, window_bounds = array<i64: 1, 128>}, {transform_indices = @transform_5, window_bounds = array<i64: 16, 128>}]} {
    %c0_i32 = arith.constant 0 : i32
    %0 = arith.cmpi eq, %arg1, %c0_i32 : i32
    %1 = arith.extui %0 : i1 to i32
    %c0_i32_0 = arith.constant 0 : i32
    %2 = arith.cmpi ne, %1, %c0_i32_0 : i32
    scf.if %2 {
      %c0_12 = arith.constant 0 : index
      %c0_13 = arith.constant 0 : index
      %24 = vector.load %arg2[%c0_12, %c0_13] : memref<16x32xbf16, #tpu.memory_space<vmem>>, vector<16x32xbf16>
      %25 = arith.extf %24 : vector<16x32xbf16> to vector<16x32xf32>
      %cst_14 = arith.constant dense<0.000000e+00> : vector<16xf32>
      %26 = vector.multi_reduction <add>, %25, %cst_14 [1] : vector<16x32xf32> to vector<16xf32>
      %27 = vector.shape_cast %26 : vector<16xf32> to vector<16x1xf32>
      %cst_15 = arith.constant 3.200000e+01 : f32
      %28 = vector.broadcast %cst_15 : f32 to vector<16x1xf32>
      %29 = arith.divf %27, %28 : vector<16x1xf32>
      %30 = vector.broadcast %29 : vector<16x1xf32> to vector<16x32xf32>
      %31 = arith.subf %25, %30 : vector<16x32xf32>
      %32 = arith.mulf %31, %31 : vector<16x32xf32>
      %cst_16 = arith.constant dense<0.000000e+00> : vector<16xf32>
      %33 = vector.multi_reduction <add>, %32, %cst_16 [1] : vector<16x32xf32> to vector<16xf32>
      %34 = vector.shape_cast %33 : vector<16xf32> to vector<16x1xf32>
      %cst_17 = arith.constant 3.200000e+01 : f32
      %35 = vector.broadcast %cst_17 : f32 to vector<16x1xf32>
      %36 = arith.divf %34, %35 : vector<16x1xf32>
      %cst_18 = arith.constant 9.99999974E-6 : f32
      %37 = vector.broadcast %cst_18 : f32 to vector<16x1xf32>
      %38 = arith.addf %36, %37 : vector<16x1xf32>
      %39 = math.rsqrt %38 : vector<16x1xf32>
      %40 = vector.broadcast %39 : vector<16x1xf32> to vector<16x32xf32>
      %41 = arith.mulf %31, %40 : vector<16x32xf32>
      %c0_19 = arith.constant 0 : index
      %c0_20 = arith.constant 0 : index
      %42 = vector.load %arg3[%c0_19, %c0_20] : memref<1x32xf32, #tpu.memory_space<vmem>>, vector<1x32xf32>
      %43 = vector.broadcast %42 : vector<1x32xf32> to vector<16x32xf32>
      %44 = arith.mulf %41, %43 : vector<16x32xf32>
      %c0_21 = arith.constant 0 : index
      %c0_22 = arith.constant 0 : index
      %45 = vector.load %arg4[%c0_21, %c0_22] : memref<1x32xf32, #tpu.memory_space<vmem>>, vector<1x32xf32>
      %46 = vector.broadcast %45 : vector<1x32xf32> to vector<16x32xf32>
      %47 = arith.addf %44, %46 : vector<16x32xf32>
      %48 = arith.truncf %47 : vector<16x32xf32> to vector<16x32xbf16>
      %c0_23 = arith.constant 0 : index
      %c0_24 = arith.constant 0 : index
      %49 = vector.load %arg8[%c0_23, %c0_24] : memref<16x32xbf16, #tpu.memory_space<vmem>>, vector<16x32xbf16>
      tpu.vector_store %arg8[%c0_23, %c0_24], %48 {strides = array<i32>} : memref<16x32xbf16, #tpu.memory_space<vmem>>, vector<16x32xbf16>,
    } else {
    }
    %c0 = arith.constant 0 : index
    %c0_1 = arith.constant 0 : index
    %3 = vector.load %arg8[%c0, %c0_1] : memref<16x32xbf16, #tpu.memory_space<vmem>>, vector<16x32xbf16>
    %c0_2 = arith.constant 0 : index
    %c0_3 = arith.constant 0 : index
    %4 = vector.load %arg5[%c0_2, %c0_3] : memref<32x128xbf16, #tpu.memory_space<vmem>>, vector<32x128xbf16>
    %cst = arith.constant dense<0.000000e+00> : vector<16x128xf32>
    %5 = tpu.matmul %3, %4, %cst {dimension_numbers = #tpu.dot_dimension_numbers<[1], [0], [0], [1], [0, 0, 1, 1], [], []>} : vector<16x32xbf16>, vector<32x128xbf16>, vector<16x128xf32> -> vector<16x128xf32>
    %c0_4 = arith.constant 0 : index
    %c0_5 = arith.constant 0 : index
    %6 = vector.load %arg6[%c0_4, %c0_5] : memref<1x128xf32, #tpu.memory_space<vmem>>, vector<1x128xf32>
    %7 = vector.broadcast %6 : vector<1x128xf32> to vector<16x128xf32>
    %8 = arith.addf %5, %7 : vector<16x128xf32>
    %9 = arith.mulf %8, %8 : vector<16x128xf32>
    %10 = arith.mulf %8, %9 : vector<16x128xf32>
    %cst_6 = arith.constant 4.471500e-02 : f32
    %11 = vector.broadcast %cst_6 : f32 to vector<16x128xf32>
    %12 = arith.mulf %11, %10 : vector<16x128xf32>
    %13 = arith.addf %8, %12 : vector<16x128xf32>
    %cst_7 = arith.constant 0.797884583 : f32
    %14 = vector.broadcast %cst_7 : f32 to vector<16x128xf32>
    %15 = arith.mulf %14, %13 : vector<16x128xf32>
    %16 = math.tanh %15 : vector<16x128xf32>
    %cst_8 = arith.constant 1.000000e+00 : f32
    %17 = vector.broadcast %cst_8 : f32 to vector<16x128xf32>
    %18 = arith.addf %17, %16 : vector<16x128xf32>
    %cst_9 = arith.constant 5.000000e-01 : f32
    %19 = vector.broadcast %cst_9 : f32 to vector<16x128xf32>
    %20 = arith.mulf %19, %18 : vector<16x128xf32>
    %21 = arith.mulf %8, %20 : vector<16x128xf32>
    %22 = arith.truncf %21 : vector<16x128xf32> to vector<16x128xbf16>
    %c0_10 = arith.constant 0 : index
    %c0_11 = arith.constant 0 : index
    %23 = vector.load %arg7[%c0_10, %c0_11] : memref<16x128xbf16, #tpu.memory_space<vmem>>, vector<16x128xbf16>
    tpu.vector_store %arg7[%c0_10, %c0_11], %22 {strides = array<i32>} : memref<16x128xbf16, #tpu.memory_space<vmem>>, vector<16x128xbf16>,
    return
  }
  func.func @transform_0(%arg0: i32, %arg1: i32) -> (i32, i32) {
    %c0_i32 = arith.constant 0 : i32
    %c0_i32_0 = arith.constant 0 : i32
    return %arg0, %c0_i32 : i32, i32
  }
  func.func @transform_1(%arg0: i32, %arg1: i32) -> (i32, i32) {
    %c0_i32 = arith.constant 0 : i32
    %c0_i32_0 = arith.constant 0 : i32
    %c0_i32_1 = arith.constant 0 : i32
    return %c0_i32, %c0_i32_0 : i32, i32
  }
  func.func @transform_2(%arg0: i32, %arg1: i32) -> (i32, i32) {
    %c0_i32 = arith.constant 0 : i32
    %c0_i32_0 = arith.constant 0 : i32
    %c0_i32_1 = arith.constant 0 : i32
    return %c0_i32, %c0_i32_0 : i32, i32
  }
  func.func @transform_3(%arg0: i32, %arg1: i32) -> (i32, i32) {
    %c0_i32 = arith.constant 0 : i32
    %c0_i32_0 = arith.constant 0 : i32
    return %c0_i32, %arg1 : i32, i32
  }
  func.func @transform_4(%arg0: i32, %arg1: i32) -> (i32, i32) {
    %c0_i32 = arith.constant 0 : i32
    %c0_i32_0 = arith.constant 0 : i32
    return %c0_i32, %arg1 : i32, i32
  }
  func.func @transform_5(%arg0: i32, %arg1: i32) -> (i32, i32) {
    %c0_i32 = arith.constant 0 : i32
    return %arg0, %arg1 : i32, i32
  }
}

module attributes {stable_mosaic.version = 11 : i64} {
  func.func @_head_proj_kernel(%arg0: i32, %arg1: i32, %arg2: memref<4x16x8xbf16, #tpu.memory_space<vmem>>, %arg3: memref<4x8x32xbf16, #tpu.memory_space<vmem>>, %arg4: memref<1x32xf32, #tpu.memory_space<vmem>>, %arg5: memref<16x32xbf16, #tpu.memory_space<vmem>>, %arg6: memref<16x32xbf16, #tpu.memory_space<vmem>>) attributes {dimension_semantics = [#tpu.dimension_semantics<parallel>, #tpu.dimension_semantics<parallel>], iteration_bounds = array<i64: 1, 1>, scalar_prefetch = 0 : i64, scratch_operands = 0 : i64, tpu.core_type = #tpu.core_type<tc>, window_params = [{transform_indices = @transform_0, window_bounds = array<i64: 4, 16, 8>}, {transform_indices = @transform_1, window_bounds = array<i64: 4, 8, 32>}, {transform_indices = @transform_2, window_bounds = array<i64: 1, 32>}, {transform_indices = @transform_3, window_bounds = array<i64: 16, 32>}, {transform_indices = @transform_4, window_bounds = array<i64: 16, 32>}]} {
    %c0 = arith.constant 0 : index
    %c0_0 = arith.constant 0 : index
    %0 = vector.load %arg4[%c0, %c0_0] : memref<1x32xf32, #tpu.memory_space<vmem>>, vector<1x32xf32>
    %c0_1 = arith.constant 0 : index
    %c0_2 = arith.constant 0 : index
    %1 = vector.load %arg5[%c0_1, %c0_2] : memref<16x32xbf16, #tpu.memory_space<vmem>>, vector<16x32xbf16>
    %2 = arith.extf %1 : vector<16x32xbf16> to vector<16x32xf32>
    %3 = vector.broadcast %0 : vector<1x32xf32> to vector<16x32xf32>
    %4 = arith.addf %3, %2 : vector<16x32xf32>
    %c0_3 = arith.constant 0 : index
    %c0_4 = arith.constant 0 : index
    %c0_5 = arith.constant 0 : index
    %5 = vector.load %arg2[%c0_3, %c0_4, %c0_5] : memref<4x16x8xbf16, #tpu.memory_space<vmem>>, vector<1x16x8xbf16>
    %6 = vector.shape_cast %5 : vector<1x16x8xbf16> to vector<16x8xbf16>
    %c0_6 = arith.constant 0 : index
    %c0_7 = arith.constant 0 : index
    %c0_8 = arith.constant 0 : index
    %7 = vector.load %arg3[%c0_6, %c0_7, %c0_8] : memref<4x8x32xbf16, #tpu.memory_space<vmem>>, vector<1x8x32xbf16>
    %8 = vector.shape_cast %7 : vector<1x8x32xbf16> to vector<8x32xbf16>
    %cst = arith.constant dense<0.000000e+00> : vector<16x32xf32>
    %9 = tpu.matmul %6, %8, %cst {dimension_numbers = #tpu.dot_dimension_numbers<[1], [0], [0], [1], [0, 0, 1, 1], [], []>} : vector<16x8xbf16>, vector<8x32xbf16>, vector<16x32xf32> -> vector<16x32xf32>
    %10 = arith.addf %4, %9 : vector<16x32xf32>
    %c1 = arith.constant 1 : index
    %c0_9 = arith.constant 0 : index
    %c0_10 = arith.constant 0 : index
    %11 = vector.load %arg2[%c1, %c0_9, %c0_10] : memref<4x16x8xbf16, #tpu.memory_space<vmem>>, vector<1x16x8xbf16>
    %12 = vector.shape_cast %11 : vector<1x16x8xbf16> to vector<16x8xbf16>
    %c1_11 = arith.constant 1 : index
    %c0_12 = arith.constant 0 : index
    %c0_13 = arith.constant 0 : index
    %13 = vector.load %arg3[%c1_11, %c0_12, %c0_13] : memref<4x8x32xbf16, #tpu.memory_space<vmem>>, vector<1x8x32xbf16>
    %14 = vector.shape_cast %13 : vector<1x8x32xbf16> to vector<8x32xbf16>
    %cst_14 = arith.constant dense<0.000000e+00> : vector<16x32xf32>
    %15 = tpu.matmul %12, %14, %cst_14 {dimension_numbers = #tpu.dot_dimension_numbers<[1], [0], [0], [1], [0, 0, 1, 1], [], []>} : vector<16x8xbf16>, vector<8x32xbf16>, vector<16x32xf32> -> vector<16x32xf32>
    %16 = arith.addf %10, %15 : vector<16x32xf32>
    %c2 = arith.constant 2 : index
    %c0_15 = arith.constant 0 : index
    %c0_16 = arith.constant 0 : index
    %17 = vector.load %arg2[%c2, %c0_15, %c0_16] : memref<4x16x8xbf16, #tpu.memory_space<vmem>>, vector<1x16x8xbf16>
    %18 = vector.shape_cast %17 : vector<1x16x8xbf16> to vector<16x8xbf16>
    %c2_17 = arith.constant 2 : index
    %c0_18 = arith.constant 0 : index
    %c0_19 = arith.constant 0 : index
    %19 = vector.load %arg3[%c2_17, %c0_18, %c0_19] : memref<4x8x32xbf16, #tpu.memory_space<vmem>>, vector<1x8x32xbf16>
    %20 = vector.shape_cast %19 : vector<1x8x32xbf16> to vector<8x32xbf16>
    %cst_20 = arith.constant dense<0.000000e+00> : vector<16x32xf32>
    %21 = tpu.matmul %18, %20, %cst_20 {dimension_numbers = #tpu.dot_dimension_numbers<[1], [0], [0], [1], [0, 0, 1, 1], [], []>} : vector<16x8xbf16>, vector<8x32xbf16>, vector<16x32xf32> -> vector<16x32xf32>
    %22 = arith.addf %16, %21 : vector<16x32xf32>
    %c3 = arith.constant 3 : index
    %c0_21 = arith.constant 0 : index
    %c0_22 = arith.constant 0 : index
    %23 = vector.load %arg2[%c3, %c0_21, %c0_22] : memref<4x16x8xbf16, #tpu.memory_space<vmem>>, vector<1x16x8xbf16>
    %24 = vector.shape_cast %23 : vector<1x16x8xbf16> to vector<16x8xbf16>
    %c3_23 = arith.constant 3 : index
    %c0_24 = arith.constant 0 : index
    %c0_25 = arith.constant 0 : index
    %25 = vector.load %arg3[%c3_23, %c0_24, %c0_25] : memref<4x8x32xbf16, #tpu.memory_space<vmem>>, vector<1x8x32xbf16>
    %26 = vector.shape_cast %25 : vector<1x8x32xbf16> to vector<8x32xbf16>
    %cst_26 = arith.constant dense<0.000000e+00> : vector<16x32xf32>
    %27 = tpu.matmul %24, %26, %cst_26 {dimension_numbers = #tpu.dot_dimension_numbers<[1], [0], [0], [1], [0, 0, 1, 1], [], []>} : vector<16x8xbf16>, vector<8x32xbf16>, vector<16x32xf32> -> vector<16x32xf32>
    %28 = arith.addf %22, %27 : vector<16x32xf32>
    %29 = arith.truncf %28 : vector<16x32xf32> to vector<16x32xbf16>
    %c0_27 = arith.constant 0 : index
    %c0_28 = arith.constant 0 : index
    %30 = vector.load %arg6[%c0_27, %c0_28] : memref<16x32xbf16, #tpu.memory_space<vmem>>, vector<16x32xbf16>
    tpu.vector_store %arg6[%c0_27, %c0_28], %29 {strides = array<i32>} : memref<16x32xbf16, #tpu.memory_space<vmem>>, vector<16x32xbf16>,
    return
  }
  func.func @transform_0(%arg0: i32, %arg1: i32) -> (i32, i32, i32) {
    %c0_i32 = arith.constant 0 : i32
    %c0_i32_0 = arith.constant 0 : i32
    %c0_i32_1 = arith.constant 0 : i32
    return %c0_i32, %arg0, %c0_i32_0 : i32, i32, i32
  }
  func.func @transform_1(%arg0: i32, %arg1: i32) -> (i32, i32, i32) {
    %c0_i32 = arith.constant 0 : i32
    %c0_i32_0 = arith.constant 0 : i32
    %c0_i32_1 = arith.constant 0 : i32
    return %c0_i32, %c0_i32_0, %arg1 : i32, i32, i32
  }
  func.func @transform_2(%arg0: i32, %arg1: i32) -> (i32, i32) {
    %c0_i32 = arith.constant 0 : i32
    %c0_i32_0 = arith.constant 0 : i32
    return %c0_i32, %arg1 : i32, i32
  }
  func.func @transform_3(%arg0: i32, %arg1: i32) -> (i32, i32) {
    %c0_i32 = arith.constant 0 : i32
    return %arg0, %arg1 : i32, i32
  }
  func.func @transform_4(%arg0: i32, %arg1: i32) -> (i32, i32) {
    %c0_i32 = arith.constant 0 : i32
    return %arg0, %arg1 : i32, i32
  }
}

module attributes {stable_mosaic.version = 11 : i64} {
  func.func @_linear_resid_kernel(%arg0: i32, %arg1: i32, %arg2: i32, %arg3: memref<16x128xbf16, #tpu.memory_space<vmem>>, %arg4: memref<128x32xbf16, #tpu.memory_space<vmem>>, %arg5: memref<1x32xf32, #tpu.memory_space<vmem>>, %arg6: memref<16x32xbf16, #tpu.memory_space<vmem>>, %arg7: memref<16x32xbf16, #tpu.memory_space<vmem>>, %arg8: memref<16x32xf32, #tpu.memory_space<vmem>>) attributes {dimension_semantics = [#tpu.dimension_semantics<parallel>, #tpu.dimension_semantics<parallel>, #tpu.dimension_semantics<arbitrary>], iteration_bounds = array<i64: 1, 1, 1>, scalar_prefetch = 0 : i64, scratch_operands = 1 : i64, tpu.core_type = #tpu.core_type<tc>, window_params = [{transform_indices = @transform_0, window_bounds = array<i64: 16, 128>}, {transform_indices = @transform_1, window_bounds = array<i64: 128, 32>}, {transform_indices = @transform_2, window_bounds = array<i64: 1, 32>}, {transform_indices = @transform_3, window_bounds = array<i64: 16, 32>}, {transform_indices = @transform_4, window_bounds = array<i64: 16, 32>}]} {
    %c0_i32 = arith.constant 0 : i32
    %0 = arith.cmpi eq, %arg2, %c0_i32 : i32
    %1 = arith.extui %0 : i1 to i32
    %c0_i32_0 = arith.constant 0 : i32
    %2 = arith.cmpi ne, %1, %c0_i32_0 : i32
    scf.if %2 {
      %cst_10 = arith.constant 0.000000e+00 : f32
      %12 = vector.broadcast %cst_10 : f32 to vector<16x32xf32>
      %c0_11 = arith.constant 0 : index
      %c0_12 = arith.constant 0 : index
      %13 = vector.load %arg8[%c0_11, %c0_12] : memref<16x32xf32, #tpu.memory_space<vmem>>, vector<16x32xf32>
      tpu.vector_store %arg8[%c0_11, %c0_12], %12 {strides = array<i32>} : memref<16x32xf32, #tpu.memory_space<vmem>>, vector<16x32xf32>,
    } else {
    }
    %c0 = arith.constant 0 : index
    %c0_1 = arith.constant 0 : index
    %3 = vector.load %arg8[%c0, %c0_1] : memref<16x32xf32, #tpu.memory_space<vmem>>, vector<16x32xf32>
    %c0_2 = arith.constant 0 : index
    %c0_3 = arith.constant 0 : index
    %4 = vector.load %arg3[%c0_2, %c0_3] : memref<16x128xbf16, #tpu.memory_space<vmem>>, vector<16x128xbf16>
    %c0_4 = arith.constant 0 : index
    %c0_5 = arith.constant 0 : index
    %5 = vector.load %arg4[%c0_4, %c0_5] : memref<128x32xbf16, #tpu.memory_space<vmem>>, vector<128x32xbf16>
    %cst = arith.constant dense<0.000000e+00> : vector<16x32xf32>
    %6 = tpu.matmul %4, %5, %cst {dimension_numbers = #tpu.dot_dimension_numbers<[1], [0], [0], [1], [0, 0, 1, 1], [], []>} : vector<16x128xbf16>, vector<128x32xbf16>, vector<16x32xf32> -> vector<16x32xf32>
    %7 = arith.addf %3, %6 : vector<16x32xf32>
    %c0_6 = arith.constant 0 : index
    %c0_7 = arith.constant 0 : index
    %8 = vector.load %arg8[%c0_6, %c0_7] : memref<16x32xf32, #tpu.memory_space<vmem>>, vector<16x32xf32>
    tpu.vector_store %arg8[%c0_6, %c0_7], %7 {strides = array<i32>} : memref<16x32xf32, #tpu.memory_space<vmem>>, vector<16x32xf32>,
    %c0_i32_8 = arith.constant 0 : i32
    %9 = arith.cmpi eq, %arg2, %c0_i32_8 : i32
    %10 = arith.extui %9 : i1 to i32
    %c0_i32_9 = arith.constant 0 : i32
    %11 = arith.cmpi ne, %10, %c0_i32_9 : i32
    scf.if %11 {
      %c0_10 = arith.constant 0 : index
      %c0_11 = arith.constant 0 : index
      %12 = vector.load %arg8[%c0_10, %c0_11] : memref<16x32xf32, #tpu.memory_space<vmem>>, vector<16x32xf32>
      %c0_12 = arith.constant 0 : index
      %c0_13 = arith.constant 0 : index
      %13 = vector.load %arg5[%c0_12, %c0_13] : memref<1x32xf32, #tpu.memory_space<vmem>>, vector<1x32xf32>
      %14 = vector.broadcast %13 : vector<1x32xf32> to vector<16x32xf32>
      %15 = arith.addf %12, %14 : vector<16x32xf32>
      %c0_14 = arith.constant 0 : index
      %c0_15 = arith.constant 0 : index
      %16 = vector.load %arg6[%c0_14, %c0_15] : memref<16x32xbf16, #tpu.memory_space<vmem>>, vector<16x32xbf16>
      %17 = arith.extf %16 : vector<16x32xbf16> to vector<16x32xf32>
      %18 = arith.addf %15, %17 : vector<16x32xf32>
      %19 = arith.truncf %18 : vector<16x32xf32> to vector<16x32xbf16>
      %c0_16 = arith.constant 0 : index
      %c0_17 = arith.constant 0 : index
      %20 = vector.load %arg7[%c0_16, %c0_17] : memref<16x32xbf16, #tpu.memory_space<vmem>>, vector<16x32xbf16>
      tpu.vector_store %arg7[%c0_16, %c0_17], %19 {strides = array<i32>} : memref<16x32xbf16, #tpu.memory_space<vmem>>, vector<16x32xbf16>,
    } else {
    }
    return
  }
  func.func @transform_0(%arg0: i32, %arg1: i32, %arg2: i32) -> (i32, i32) {
    %c0_i32 = arith.constant 0 : i32
    return %arg0, %arg2 : i32, i32
  }
  func.func @transform_1(%arg0: i32, %arg1: i32, %arg2: i32) -> (i32, i32) {
    %c0_i32 = arith.constant 0 : i32
    return %arg2, %arg1 : i32, i32
  }
  func.func @transform_2(%arg0: i32, %arg1: i32, %arg2: i32) -> (i32, i32) {
    %c0_i32 = arith.constant 0 : i32
    %c0_i32_0 = arith.constant 0 : i32
    return %c0_i32, %arg1 : i32, i32
  }
  func.func @transform_3(%arg0: i32, %arg1: i32, %arg2: i32) -> (i32, i32) {
    %c0_i32 = arith.constant 0 : i32
    return %arg0, %arg1 : i32, i32
  }
  func.func @transform_4(%arg0: i32, %arg1: i32, %arg2: i32) -> (i32, i32) {
    %c0_i32 = arith.constant 0 : i32
    return %arg0, %arg1 : i32, i32
  }
}

module attributes {stable_mosaic.version = 11 : i64} {
  func.func @_ln_linear_kernel(%arg0: i32, %arg1: i32, %arg2: memref<16x32xbf16, #tpu.memory_space<vmem>>, %arg3: memref<1x32xf32, #tpu.memory_space<vmem>>, %arg4: memref<1x32xf32, #tpu.memory_space<vmem>>, %arg5: memref<32x64xbf16, #tpu.memory_space<vmem>>, %arg6: memref<1x64xf32, #tpu.memory_space<vmem>>, %arg7: memref<16x64xf32, #tpu.memory_space<vmem>>, %arg8: memref<16x32xbf16, #tpu.memory_space<vmem>>) attributes {dimension_semantics = [#tpu.dimension_semantics<parallel>, #tpu.dimension_semantics<arbitrary>], iteration_bounds = array<i64: 1, 1>, scalar_prefetch = 0 : i64, scratch_operands = 1 : i64, tpu.core_type = #tpu.core_type<tc>, window_params = [{transform_indices = @transform_0, window_bounds = array<i64: 16, 32>}, {pipeline_mode = #tpu.pipeline_mode<synchronous>, transform_indices = @transform_1, window_bounds = array<i64: 1, 32>}, {pipeline_mode = #tpu.pipeline_mode<synchronous>, transform_indices = @transform_2, window_bounds = array<i64: 1, 32>}, {transform_indices = @transform_3, window_bounds = array<i64: 32, 64>}, {transform_indices = @transform_4, window_bounds = array<i64: 1, 64>}, {transform_indices = @transform_5, window_bounds = array<i64: 16, 64>}]} {
    %c0_i32 = arith.constant 0 : i32
    %0 = arith.cmpi eq, %arg1, %c0_i32 : i32
    %1 = arith.extui %0 : i1 to i32
    %c0_i32_0 = arith.constant 0 : i32
    %2 = arith.cmpi ne, %1, %c0_i32_0 : i32
    scf.if %2 {
      %c0_8 = arith.constant 0 : index
      %c0_9 = arith.constant 0 : index
      %10 = vector.load %arg2[%c0_8, %c0_9] : memref<16x32xbf16, #tpu.memory_space<vmem>>, vector<16x32xbf16>
      %11 = arith.extf %10 : vector<16x32xbf16> to vector<16x32xf32>
      %cst_10 = arith.constant dense<0.000000e+00> : vector<16xf32>
      %12 = vector.multi_reduction <add>, %11, %cst_10 [1] : vector<16x32xf32> to vector<16xf32>
      %13 = vector.shape_cast %12 : vector<16xf32> to vector<16x1xf32>
      %cst_11 = arith.constant 3.200000e+01 : f32
      %14 = vector.broadcast %cst_11 : f32 to vector<16x1xf32>
      %15 = arith.divf %13, %14 : vector<16x1xf32>
      %16 = vector.broadcast %15 : vector<16x1xf32> to vector<16x32xf32>
      %17 = arith.subf %11, %16 : vector<16x32xf32>
      %18 = arith.mulf %17, %17 : vector<16x32xf32>
      %cst_12 = arith.constant dense<0.000000e+00> : vector<16xf32>
      %19 = vector.multi_reduction <add>, %18, %cst_12 [1] : vector<16x32xf32> to vector<16xf32>
      %20 = vector.shape_cast %19 : vector<16xf32> to vector<16x1xf32>
      %cst_13 = arith.constant 3.200000e+01 : f32
      %21 = vector.broadcast %cst_13 : f32 to vector<16x1xf32>
      %22 = arith.divf %20, %21 : vector<16x1xf32>
      %cst_14 = arith.constant 9.99999974E-6 : f32
      %23 = vector.broadcast %cst_14 : f32 to vector<16x1xf32>
      %24 = arith.addf %22, %23 : vector<16x1xf32>
      %25 = math.rsqrt %24 : vector<16x1xf32>
      %26 = vector.broadcast %25 : vector<16x1xf32> to vector<16x32xf32>
      %27 = arith.mulf %17, %26 : vector<16x32xf32>
      %c0_15 = arith.constant 0 : index
      %c0_16 = arith.constant 0 : index
      %28 = vector.load %arg3[%c0_15, %c0_16] : memref<1x32xf32, #tpu.memory_space<vmem>>, vector<1x32xf32>
      %29 = vector.broadcast %28 : vector<1x32xf32> to vector<16x32xf32>
      %30 = arith.mulf %27, %29 : vector<16x32xf32>
      %c0_17 = arith.constant 0 : index
      %c0_18 = arith.constant 0 : index
      %31 = vector.load %arg4[%c0_17, %c0_18] : memref<1x32xf32, #tpu.memory_space<vmem>>, vector<1x32xf32>
      %32 = vector.broadcast %31 : vector<1x32xf32> to vector<16x32xf32>
      %33 = arith.addf %30, %32 : vector<16x32xf32>
      %34 = arith.truncf %33 : vector<16x32xf32> to vector<16x32xbf16>
      %c0_19 = arith.constant 0 : index
      %c0_20 = arith.constant 0 : index
      %35 = vector.load %arg8[%c0_19, %c0_20] : memref<16x32xbf16, #tpu.memory_space<vmem>>, vector<16x32xbf16>
      tpu.vector_store %arg8[%c0_19, %c0_20], %34 {strides = array<i32>} : memref<16x32xbf16, #tpu.memory_space<vmem>>, vector<16x32xbf16>,
    } else {
    }
    %c0 = arith.constant 0 : index
    %c0_1 = arith.constant 0 : index
    %3 = vector.load %arg8[%c0, %c0_1] : memref<16x32xbf16, #tpu.memory_space<vmem>>, vector<16x32xbf16>
    %c0_2 = arith.constant 0 : index
    %c0_3 = arith.constant 0 : index
    %4 = vector.load %arg5[%c0_2, %c0_3] : memref<32x64xbf16, #tpu.memory_space<vmem>>, vector<32x64xbf16>
    %cst = arith.constant dense<0.000000e+00> : vector<16x64xf32>
    %5 = tpu.matmul %3, %4, %cst {dimension_numbers = #tpu.dot_dimension_numbers<[1], [0], [0], [1], [0, 0, 1, 1], [], []>} : vector<16x32xbf16>, vector<32x64xbf16>, vector<16x64xf32> -> vector<16x64xf32>
    %c0_4 = arith.constant 0 : index
    %c0_5 = arith.constant 0 : index
    %6 = vector.load %arg6[%c0_4, %c0_5] : memref<1x64xf32, #tpu.memory_space<vmem>>, vector<1x64xf32>
    %7 = vector.broadcast %6 : vector<1x64xf32> to vector<16x64xf32>
    %8 = arith.addf %5, %7 : vector<16x64xf32>
    %c0_6 = arith.constant 0 : index
    %c0_7 = arith.constant 0 : index
    %9 = vector.load %arg7[%c0_6, %c0_7] : memref<16x64xf32, #tpu.memory_space<vmem>>, vector<16x64xf32>
    tpu.vector_store %arg7[%c0_6, %c0_7], %8 {strides = array<i32>} : memref<16x64xf32, #tpu.memory_space<vmem>>, vector<16x64xf32>,
    return
  }
  func.func @transform_0(%arg0: i32, %arg1: i32) -> (i32, i32) {
    %c0_i32 = arith.constant 0 : i32
    %c0_i32_0 = arith.constant 0 : i32
    return %arg0, %c0_i32 : i32, i32
  }
  func.func @transform_1(%arg0: i32, %arg1: i32) -> (i32, i32) {
    %c0_i32 = arith.constant 0 : i32
    %c0_i32_0 = arith.constant 0 : i32
    %c0_i32_1 = arith.constant 0 : i32
    return %c0_i32, %c0_i32_0 : i32, i32
  }
  func.func @transform_2(%arg0: i32, %arg1: i32) -> (i32, i32) {
    %c0_i32 = arith.constant 0 : i32
    %c0_i32_0 = arith.constant 0 : i32
    %c0_i32_1 = arith.constant 0 : i32
    return %c0_i32, %c0_i32_0 : i32, i32
  }
  func.func @transform_3(%arg0: i32, %arg1: i32) -> (i32, i32) {
    %c0_i32 = arith.constant 0 : i32
    %c0_i32_0 = arith.constant 0 : i32
    return %c0_i32, %arg1 : i32, i32
  }
  func.func @transform_4(%arg0: i32, %arg1: i32) -> (i32, i32) {
    %c0_i32 = arith.constant 0 : i32
    %c0_i32_0 = arith.constant 0 : i32
    return %c0_i32, %arg1 : i32, i32
  }
  func.func @transform_5(%arg0: i32, %arg1: i32) -> (i32, i32) {
    %c0_i32 = arith.constant 0 : i32
    return %arg0, %arg1 : i32, i32
  }
}

</mosaic_0001>

<bundles_post_ra>
// kernel: transformer_lm_forward.14
= control target key start
LH: loop header
LB: loop body
LE: loop exit
PB: predicated region body
PF: predicated region fallthrough
CT: control target
= control target key end

     0   :  { %vm29_vm0 = vcmask 261120   ;;  %v241_v16 = vmov 0.0   ;;  %vm242_vm1 = vmmov 0   ;;  %vm83_vm2 = vcmask 257024   ;;  %s299_s0 = inlined_call_operand.vmem [shape: bf16[16,32], index: 0, kind: input, shape index: {}]   ;;  %s300_s3 = inlined_call_operand.vmem [shape: bf16[32,128], index: 3, kind: input, shape index: {}]   ;;  %s301_s1 = inlined_call_operand.vmem [shape: f32[1,32], index: 1, kind: input, shape index: {}]   ;;  %s302_s2 = inlined_call_operand.vmem [shape: f32[1,32], index: 2, kind: input, shape index: {}]   ;;  %s303_s4 = inlined_call_operand.vmem [shape: f32[1,128], index: 4, kind: input, shape index: {}]   ;;  %s304_s5 = inlined_call_operand.vmem [shape: bf16[16,128], index: 5, kind: output, shape index: {}]  }
   0x1   :  { %v209_v0 = vld [vmem:[%s299_s0] sm:$0xff]   ;;  %v230_v15 = vld [vmem:[%s300_s3 + $0x8] sm:$0xff]   ;;  %220 = vmatprep.subr.bf16.mxu0 %v241_v16  ;;  %224 = vmatprep.mubr.msk.bf16.mxu0 %vm242_vm1, %v241_v16 }
   0x2   :  { %v210_v1 = vunpack.c.l.bf16 %v209_v0  ;;  %v211_v2 = vunpack.c.h.bf16 %v209_v0  ;;  %221 = vmatpush3.bf16.msra.mxu0 %v230_v15  ;;  %v231_v17 = vld [vmem:[%s300_s3] sm:$0xff]  }
   0x3   :  { %222 = vmatprep.subr.bf16.mxu0 %v241_v16  ;;  %v193_v25 = vld [vmem:[%s301_s1] ss:$0 sm:$0xff] }
   0x4   :  { %v30_v3 = vsel %vm29_vm0, %v210_v1, 0.0  ;;  %v33_v4 = vsel %vm29_vm0, %v211_v2, 0.0  ;;  %v194_v27 = vld [vmem:[%s302_s2] ss:$0 sm:$0xff] }
   0x5   :  { %31 = vadd.xlane.f32.xlu0 %v30_v3  ;;  %v197_v37 = vld [vmem:[%s303_s4] ss:$0 sm:$0xff] }
   0x6   :  { %223 = vmatpush3.bf16.msra.mxu0 %v231_v17 }
   0x9   :  { %34 = vadd.xlane.f32.xlu0 %v33_v4 }
  0x8e   :  { %v32_v5 = vpop.xlane.xlu0 %31 }
  0x8f   :  { %v37_v6 = vmul.f32 0.03125, %v32_v5 }
  0x91   :  { %v39_v7 = vsub.f32 %v210_v1, %v37_v6 }
  0x92   :  { %v35_v8 = vpop.xlane.xlu0 %34 }
  0x93   :  { %v38_v9 = vmul.f32 0.03125, %v35_v8  ;;  %v41_v10 = vmul.f32 %v39_v7, %v39_v7 }
  0x95   :  { %v40_v11 = vsub.f32 %v211_v2, %v38_v9  ;;  %v43_v12 = vsel %vm29_vm0, %v41_v10, 0.0 }
  0x96   :  { %44 = vadd.xlane.f32.xlu1 %v43_v12 }
  0x97   :  { %v42_v13 = vmul.f32 %v40_v11, %v40_v11 }
  0x99   :  { %v46_v14 = vsel %vm29_vm0, %v42_v13, 0.0 }
  0x9a   :  { %47 = vadd.xlane.f32.xlu1 %v46_v14 }
 0x11f   :  { %v45_v18 = vpop.xlane.xlu1 %44 }
 0x120   :  { %v49_v19 = vmul.f32 0.03125, %v45_v18 }
 0x122   :  { %v51_v20 = vadd.f32 1e-05, %v49_v19 }
 0x123   :  { %v48_v21 = vpop.xlane.xlu1 %47 }
 0x124   :  { %233 = vrsqrt.f32 %v51_v20  ;;  %v50_v22 = vmul.f32 0.03125, %v48_v21 }
 0x126   :  { %v52_v23 = vadd.f32 1e-05, %v50_v22 }
 0x128   :  { %235 = vrsqrt.f32 %v52_v23 }
 0x131   :  { %v234_v24 = vpop.eup %233 }
 0x132   :  { %v55_v26 = vmul.f32 %v234_v24, %v39_v7 }
 0x134   :  { %v64_v28 = vmul.f32 %v193_v25, %v55_v26 }
 0x135   :  { %v236_v29 = vpop.eup %235 }
 0x136   :  { %v73_v30 = vadd.f32 %v194_v27, %v64_v28  ;;  %v56_v31 = vmul.f32 %v236_v29, %v40_v11 }
 0x138   :  { %v204_v32 = vpack.c.bf16 %v73_v30, %v73_v30  ;;  %v65_v33 = vmul.f32 %v193_v25, %v56_v31 }
 0x13a   :  { %84 = vst.msk [vmem:[#allocation2] sm:$0xf] %vm83_vm2, %v204_v32  ;;  %v74_v34 = vadd.f32 %v194_v27, %v65_v33 }
 0x13c   :  { %v205_v35 = vpack.c.bf16 %v74_v34, %v74_v34 }
 0x13e   :  { %85 = vst.msk [vmem:[#allocation2 + $0x4] sm:$0xf] %vm83_vm2, %v205_v35 }
 0x145   :  { %v232_v36 = vld [vmem:[#allocation2] sm:$0xff]  }
 0x146   :  { %225 = vmatmul.mubr.msk.bf16.vlgmr.msra.gmra.mxu0 %vm29_vm0, %v232_v36 }
 0x206   :  { %v154_v38 = vpop.f32.mrf.mxu0 }
 0x207   :  { %v155_v39 = vadd.f32 %v197_v37, %v154_v38 }
 0x208   :  { %v226_v40 = vpop.f32.mrf.mxu0 }
 0x209   :  { %v161_v41 = vmul.f32 %v155_v39, %v155_v39 }
 0x20a   :  { %v157_v42 = vpop.f32.mrf.mxu0 }
 0x20b   :  { %v163_v43 = vmul.f32 %v161_v41, %v155_v39  ;;  %v158_v44 = vadd.f32 %v197_v37, %v157_v42 }
 0x20c   :  { %v227_v45 = vpop.f32.mrf.mxu0 }
 0x20d   :  { %v165_v46 = vmul.f32 0.044715, %v163_v43  ;;  %v162_v47 = vmul.f32 %v158_v44, %v158_v44 }
 0x20f   :  { %v167_v48 = vadd.f32 %v165_v46, %v155_v39  ;;  %v164_v49 = vmul.f32 %v162_v47, %v158_v44 }
 0x211   :  { %v169_v50 = vmul.f32 0.7978846, %v167_v48  ;;  %v166_v51 = vmul.f32 0.044715, %v164_v49 }
 0x213   :  { %237 = vtanh.f32 %v169_v50  ;;  %v168_v52 = vadd.f32 %v166_v51, %v158_v44 }
 0x215   :  { %v170_v53 = vmul.f32 0.7978846, %v168_v52 }
 0x217   :  { %239 = vtanh.f32 %v170_v53 }
 0x220   :  { %v238_v54 = vpop.eup %237 }
 0x221   :  { %v173_v55 = vadd.f32 1.0, %v238_v54 }
 0x223   :  { %v175_v57 = vmul.f32 0.5, %v173_v55 }
 0x224   :  { %v240_v56 = vpop.eup %239 }
 0x225   :  { %v174_v58 = vadd.f32 1.0, %v240_v56  ;;  %v177_v60 = vmul.f32 %v175_v57, %v155_v39 }
 0x227   :  { %v176_v59 = vmul.f32 0.5, %v174_v58 }
 0x229   :  { %v178_v61 = vmul.f32 %v176_v59, %v158_v44 }
 0x22b   :  { %v215_v62 = vpack.c.bf16 %v178_v61, %v177_v60 }
 0x22d   :  { %216 = vst [vmem:[%s304_s5] sm:$0xff] %v215_v62  }

// kernel: transformer_lm_forward.11
= control target key start
LH: loop header
LB: loop body
LE: loop exit
PB: predicated region body
PF: predicated region fallthrough
CT: control target
= control target key end

     0   :  { %s675_s18 = smov 0   ;;  %s677_s19 = smov 0   ;;  %s742_s0 = inlined_call_operand.vmem [shape: bf16[16,32], index: 0, kind: input, shape index: {}]   ;;  %s743_s1 = inlined_call_operand.vmem [shape: f32[1,32], index: 1, kind: input, shape index: {}]   ;;  %s744_s2 = inlined_call_operand.vmem [shape: f32[1,32], index: 2, kind: input, shape index: {}]   ;;  %s745_s3 = inlined_call_operand.vmem [shape: bf16[12,32,8], index: 3, kind: input, shape index: {}]   ;;  %s746_s4 = inlined_call_operand.vmem [shape: f32[12,1,8], index: 4, kind: input, shape index: {}]   ;;  %s747_s5 = inlined_call_operand.vmem [shape: bf16[12,16,8], index: 5, kind: output, shape index: {}]  }
   0x1   :  { %s679_s20 = smov 0  }
   0x2 LB: > { %s24_s21 = sadd.s32 1, %s637_s19  ;;  %p546_p0 = scmp.ge.s32.totalorder %s641_s20, 1  ;;  %s641_s20 = sphi %s679_s20, %s15_s20   ;;  %s637_s19 = sphi %s677_s19, %s749_s19   ;;  %s633_s18 = sphi %s675_s18, %s748_s18  }
   0x3   : > { %p25_p1 = scmp.ge.s32.totalorder %s24_s21, 12  ;;  %p220_p2 = scmp.lt.s32.totalorder %s641_s20, 13 }
   0x5   : > { %s751_s21 = smov (%p25_p1, %s24_s21), 0  ;;  %p221_p3 = pnand %p546_p0, %p220_p2 }
   0x6   : > { %p266_p4 = scmp.lt.s32.totalorder (!%p221_p3), %s633_s18, 11  ;;  %p551_p5 = scmp.ne.s32.totalorder (!%p221_p3), %s633_s18, 0 }
   0x7   : > { %224 = sbr.rel (%p221_p3) target bundleno = 547 (0x223), region = 40 }
   0xc   : > { %s693_s22 = scalar_select %p266_p4, %s633_s18, 11 }
   0xd   : > { %288 = sbr.rel (%p551_p5) target bundleno = 336 (0x150), region = 44 }
   0xe   : > { %s565_s23 = sshll.u32 %s693_s22, 4  ;;  %s273_s26 = scalar_lea.vmem %s746_s4, %s693_s22 }
   0xf   : > { %s703_s29 = scalar_lea.vmem %s745_s3, %s565_s23  ;;  %s566_s30 = sshll.u32 %s693_s22, 3 }
  0x10   : > { %s709_s8 = scalar_lea.vmem %s747_s5, %s566_s30 }
  0x12   : > { %v572_v0 = vld [vmem:[%s742_s0] sm:$0xff]   ;;  %vm293_vm0 = vcmask 261120   ;;  %vm347_vm1 = vcmask 257024  }
  0x13   : > { %v573_v1 = vunpack.c.l.bf16 %v572_v0  ;;  %v574_v2 = vunpack.c.h.bf16 %v572_v0  ;;  %v552_v22 = vld [vmem:[%s743_s1] ss:$0 sm:$0xff] }
  0x14   : > { %v553_v24 = vld [vmem:[%s744_s2] ss:$0 sm:$0xff] }
  0x15   : > { %v294_v3 = vsel %vm293_vm0, %v573_v1, 0.0  ;;  %v297_v4 = vsel %vm293_vm0, %v574_v2, 0.0 }
  0x16   : > { %295 = vadd.xlane.f32.xlu0 %v294_v3 }
  0x1a   : > { %298 = vadd.xlane.f32.xlu0 %v297_v4 }
  0x9f   : > { %v296_v5 = vpop.xlane.xlu0 %295 }
  0xa0   : > { %v301_v6 = vmul.f32 0.03125, %v296_v5 }
  0xa2   : > { %v303_v7 = vsub.f32 %v573_v1, %v301_v6 }
  0xa3   : > { %v299_v8 = vpop.xlane.xlu0 %298 }
  0xa4   : > { %v302_v9 = vmul.f32 0.03125, %v299_v8  ;;  %v305_v10 = vmul.f32 %v303_v7, %v303_v7 }
  0xa6   : > { %v304_v11 = vsub.f32 %v574_v2, %v302_v9  ;;  %v307_v12 = vsel %vm293_vm0, %v305_v10, 0.0 }
  0xa7   : > { %308 = vadd.xlane.f32.xlu1 %v307_v12 }
  0xa8   : > { %v306_v13 = vmul.f32 %v304_v11, %v304_v11 }
  0xaa   : > { %v310_v14 = vsel %vm293_vm0, %v306_v13, 0.0 }
  0xab   : > { %311 = vadd.xlane.f32.xlu1 %v310_v14 }
 0x130   : > { %v309_v15 = vpop.xlane.xlu1 %308 }
 0x131   : > { %v313_v16 = vmul.f32 0.03125, %v309_v15 }
 0x133   : > { %v315_v17 = vadd.f32 1e-05, %v313_v16 }
 0x134   : > { %v312_v18 = vpop.xlane.xlu1 %311 }
 0x135   : > { %612 = vrsqrt.f32 %v315_v17  ;;  %v314_v19 = vmul.f32 0.03125, %v312_v18 }
 0x137   : > { %v316_v20 = vadd.f32 1e-05, %v314_v19 }
 0x139   : > { %614 = vrsqrt.f32 %v316_v20 }
 0x142   : > { %v613_v21 = vpop.eup %612 }
 0x143   : > { %v319_v23 = vmul.f32 %v613_v21, %v303_v7 }
 0x145   : > { %v328_v25 = vmul.f32 %v552_v22, %v319_v23 }
 0x146   : > { %v615_v26 = vpop.eup %614 }
 0x147   : > { %v337_v27 = vadd.f32 %v553_v24, %v328_v25  ;;  %v320_v28 = vmul.f32 %v615_v26, %v304_v11 }
 0x149   : > { %v567_v29 = vpack.c.bf16 %v337_v27, %v337_v27  ;;  %v329_v30 = vmul.f32 %v552_v22, %v320_v28 }
 0x14b   : > { %348 = vst.msk [vmem:[#allocation2] sm:$0xf] %vm347_vm1, %v567_v29  ;;  %v338_v31 = vadd.f32 %v553_v24, %v329_v30 }
 0x14d   : > { %v568_v32 = vpack.c.bf16 %v338_v31, %v338_v31 }
 0x14f   : > { %349 = vst.msk [vmem:[#allocation2 + $0x4] sm:$0xf] %vm347_vm1, %v568_v32 }
 0x150 PF: > { %v616_v33 = vld [vmem:[%s703_s29 + $0x8] sm:$0xff]   ;;  %v643_v34 = vmov 0.0   ;;  %v617_v35 = vld [vmem:[%s703_s29] sm:$0xff]   ;;  %vm644_vm2 = vmmov 0   ;;  %vm380_vm3 = vcmask 261120   ;;  %vm433_vm4 = vcmask 60416  }
 0x151   : > { %578 = vmatprep.subr.bf16.mxu0 %v643_v34  ;;  %582 = vmatprep.mubr.msk.bf16.mxu0 %vm644_vm2, %v643_v34  ;;  %v556_v37 = vld [vmem:[%s273_s26] ss:$0 sm:$0xff] }
 0x152   : > { %579 = vmatpush3.bf16.msra.mxu0 %v616_v33 }
 0x153   : > { %580 = vmatprep.subr.bf16.mxu0 %v643_v34 }
 0x156   : > { %v618_v36 = vld [vmem:[#allocation2] sm:$0xff]   ;;  %581 = vmatpush3.bf16.msra.mxu0 %v617_v35 }
 0x159   : > { %583 = vmatmul.mubr.msk.bf16.vlgmr.msra.gmra.mxu0 %vm380_vm3, %v618_v36 }
 0x219   : > { %v418_v38 = vpop.f32.mrf.mxu0 }
 0x21a   : > { %v419_v39 = vadd.f32 %v556_v37, %v418_v38 }
 0x21b   : > { %v584_v40 = vpop.f32.mrf.mxu0 }
 0x21c   : > { %v569_v41 = vpack.c.bf16 %v419_v39, %v419_v39 }
 0x21d   : > { %v421_v42 = vpop.f32.mrf.mxu0 }
 0x21e   : > { %434 = vst.msk [vmem:[%s709_s8] sm:$0xf] %vm433_vm4, %v569_v41  ;;  %v422_v43 = vadd.f32 %v556_v37, %v421_v42 }
 0x21f   : > { %v585_v44 = vpop.f32.mrf.mxu0 }
 0x220   : > { %v570_v45 = vpack.c.bf16 %v422_v43, %v422_v43 }
 0x222   : > { %435 = vst.msk [vmem:[%s709_s8 + $0x4] sm:$0xf] %vm433_vm4, %v570_v45 }
 0x223 PF: > { %s15_s20 = sadd.s32 1, %s641_s20   ;;  %s748_s18 = smov %s637_s19 }
 0x224   : > { %p12_p6 = scmp.ge.s32.totalorder %s15_s20, 14   ;;  %s749_s19 = smov %s751_s21 }
 0x226   :  { %14 = sbr.rel (!%p12_p6) target bundleno = 2 (0x2), region = 80 }

// kernel: transformer_lm_forward.13
= control target key start
LH: loop header
LB: loop body
LE: loop exit
PB: predicated region body
PF: predicated region fallthrough
CT: control target
= control target key end

     0   :  { %vm43_vm0 = vcmask 1043456   ;;  %vm39_vm1 = vcmask 64512   ;;  %v346_v0 = vmov 0.0   ;;  %vm347_vm2 = vmmov 0   ;;  %s421_s1 = inlined_call_operand.vmem [shape: bf16[4,8,32], index: 1, kind: input, shape index: {}]   ;;  %s422_s0 = inlined_call_operand.vmem [shape: bf16[4,16,8], index: 0, kind: input, shape index: {}]   ;;  %s423_s3 = inlined_call_operand.vmem [shape: bf16[16,32], index: 3, kind: input, shape index: {}]   ;;  %s424_s2 = inlined_call_operand.vmem [shape: f32[1,32], index: 2, kind: input, shape index: {}]   ;;  %s425_s4 = inlined_call_operand.vmem [shape: bf16[16,32], index: 4, kind: output, shape index: {}]  }
   0x1   :  { %316 = vmatprep.subr.bf16.mxu0 %v346_v0  ;;  %322 = vmatprep.subr.bf16.mxu1 %v346_v0  ;;  %v33_v1 = vld [vmem:[%s421_s1] sm:$0xf]  ;;  %v287_v2 = vld [vmem:[%s421_s1 + $0x4] sm:$0xf]  ;;  %v343_v6 = vld [vmem:[%s422_s0 + $0x8] sm:$0xff]   ;;  %vm275_vm3 = vcmask 257024  }
   0x2   :  { %v45_v3 = vsel %vm43_vm0, %v33_v1, 0  ;;  %v104_v4 = vsel %vm43_vm0, %v287_v2, 0  ;;  %318 = vmatprep.mubr.msk.bf16.mxu0 %vm347_vm2, %v346_v0  ;;  %324 = vmatprep.mubr.msk.bf16.mxu1 %vm347_vm2, %v346_v0  ;;  %v342_v5 = vld [vmem:[%s422_s0] sm:$0xff]   ;;  %v292_v7 = vld [vmem:[%s421_s1 + $0x8] sm:$0xf]  ;;  %v344_v11 = vld [vmem:[%s422_s0 + $0x10] sm:$0xff]  }
   0x3   :  { %317 = vmatpush3.bf16.msra.mxu0 %v45_v3  ;;  %323 = vmatpush3.bf16.msra.mxu1 %v104_v4  ;;  %v163_v8 = vsel %vm43_vm0, %v292_v7, 0  ;;  %v297_v9 = vld [vmem:[%s421_s1 + $0xc] sm:$0xf]  ;;  %v345_v12 = vld [vmem:[%s422_s0 + $0x18] sm:$0xff]   ;;  %v305_v13 = vld [vmem:[%s423_s3] sm:$0xff]  }
   0x4   :  { %328 = vmatprep.subr.bf16.mxu0 %v346_v0  ;;  %334 = vmatprep.subr.bf16.mxu1 %v346_v0  ;;  %v222_v10 = vsel %vm43_vm0, %v297_v9, 0  ;;  %v306_v14 = vunpack.c.l.bf16 %v305_v13  ;;  %v282_v15 = vld [vmem:[%s424_s2] ss:$0 sm:$0xff]  ;;  %v307_v17 = vunpack.c.h.bf16 %v305_v13 }
   0x6   :  { %319 = vmatmul.mubr.msk.bf16.vlgmr.msra.gmra.mxu0 %vm39_vm1, %v342_v5  ;;  %325 = vmatmul.mubr.msk.bf16.vlgmr.msra.gmra.mxu1 %vm39_vm1, %v343_v6  ;;  %v29_v16 = vadd.f32 %v306_v14, %v282_v15  ;;  %v30_v23 = vadd.f32 %v307_v17, %v282_v15 }
   0x7   :  { %329 = vmatpush3.bf16.msra.mxu0 %v163_v8  ;;  %335 = vmatpush3.bf16.msra.mxu1 %v222_v10 }
   0x8   :  { %330 = vmatprep.mubr.msk.bf16.mxu0 %vm347_vm2, %v346_v0  ;;  %336 = vmatprep.mubr.msk.bf16.mxu1 %vm347_vm2, %v346_v0 }
   0xe   :  { %331 = vmatmul.mubr.msk.bf16.vlgmr.msra.gmra.mxu0 %vm39_vm1, %v344_v11  ;;  %337 = vmatmul.mubr.msk.bf16.vlgmr.msra.gmra.mxu1 %vm39_vm1, %v345_v12 }
  0xc6   :  { %v81_v18 = vpop.f32.mrf.mxu0  ;;  %v140_v19 = vpop.f32.mrf.mxu1 }
  0xc7   :  { %v88_v22 = vadd.f32 %v81_v18, %v29_v16 }
  0xc8   :  { %v320_v20 = vpop.f32.mrf.mxu0  ;;  %v326_v21 = vpop.f32.mrf.mxu1 }
  0xc9   :  { %v147_v28 = vadd.f32 %v140_v19, %v88_v22 }
  0xca   :  { %v84_v24 = vpop.f32.mrf.mxu0  ;;  %v143_v25 = vpop.f32.mrf.mxu1 }
  0xcb   :  { %v89_v29 = vadd.f32 %v84_v24, %v30_v23 }
  0xcc   :  { %v321_v26 = vpop.f32.mrf.mxu0  ;;  %v327_v27 = vpop.f32.mrf.mxu1 }
  0xcd   :  { %v148_v35 = vadd.f32 %v143_v25, %v89_v29 }
  0xce   :  { %v199_v30 = vpop.f32.mrf.mxu0  ;;  %v258_v31 = vpop.f32.mrf.mxu1 }
  0xcf   :  { %v206_v32 = vadd.f32 %v199_v30, %v147_v28 }
  0xd0   :  { %v332_v33 = vpop.f32.mrf.mxu0  ;;  %v338_v34 = vpop.f32.mrf.mxu1 }
  0xd1   :  { %v265_v36 = vadd.f32 %v258_v31, %v206_v32 }
  0xd2   :  { %v202_v37 = vpop.f32.mrf.mxu0  ;;  %v261_v38 = vpop.f32.mrf.mxu1 }
  0xd3   :  { %v302_v39 = vpack.c.bf16 %v265_v36, %v265_v36  ;;  %v207_v40 = vadd.f32 %v202_v37, %v148_v35 }
  0xd4   :  { %v333_v41 = vpop.f32.mrf.mxu0  ;;  %v339_v42 = vpop.f32.mrf.mxu1 }
  0xd5   :  { %276 = vst.msk [vmem:[%s425_s4] sm:$0xf] %vm275_vm3, %v302_v39  ;;  %v266_v43 = vadd.f32 %v261_v38, %v207_v40 }
  0xd7   :  { %v303_v44 = vpack.c.bf16 %v266_v43, %v266_v43 }
  0xd9   :  { %277 = vst.msk [vmem:[%s425_s4 + $0x4] sm:$0xf] %vm275_vm3, %v303_v44 }

// kernel: transformer_lm_forward.12
= control target key start
LH: loop header
LB: loop body
LE: loop exit
PB: predicated region body
PF: predicated region fallthrough
CT: control target
= control target key end

     0   :  { %s951_s22 = smov 0   ;;  %s953_s23 = smov 0   ;;  %s1053_s0 = inlined_call_operand.<no memory space> [shape: s32[1], index: 0, kind: input, shape index: {}, may-alias: {0,1}]   ;;  %s1054_s1 = inlined_call_operand.<no memory space> [shape: s32[1], index: 1, kind: input, shape index: {}, may-alias: {0,1}]   ;;  %s1055_s2 = inlined_call_operand.vmem [shape: bf16[12,2,8,8], index: 2, kind: input, shape index: {}, may-alias: {2,3,4}]   ;;  %s1056_s3 = inlined_call_operand.vmem [shape: bf16[12,2,8,8], index: 3, kind: input, shape index: {}, may-alias: {2,3,4}]   ;;  %s1057_s4 = inlined_call_operand.vmem [shape: bf16[12,2,8,8], index: 4, kind: input, shape index: {}, may-alias: {2,3,4}]   ;;  %s1058_s5 = inlined_call_operand.vmem [shape: bf16[4,2,8,8], index: 5, kind: output, shape index: {}]  }
   0x1   :  { %1059 = sst [smem:[#allocation10_spill]] %s1055_s2  ;;  %s955_s24 = smov 0  }
   0x2   :  { %10 = sst [smem:[#allocation6]] %s1053_s0  ;;  %s957_s25 = smov 0  }
   0x3   :  { %11 = sst [smem:[#allocation7]] %s1054_s1  ;;  %s959_s26 = smov 0  }
   0x4 LB: > { %s32_s0 = sadd.s32 1, %s895_s24  ;;  %s36_s1 = sadd.s32 1, %s899_s25  ;;  %s903_s26 = sphi %s959_s26, %s17_s26   ;;  %s899_s25 = sphi %s957_s25, %s1068_s25   ;;  %s895_s24 = sphi %s955_s24, %s1067_s24   ;;  %s891_s23 = sphi %s953_s23, %s1066_s23   ;;  %s887_s22 = sphi %s951_s22, %s1065_s22  }
   0x5   : > { %p34_p0 = scmp.ge.s32.totalorder %s32_s0, 2  ;;  %p760_p1 = scmp.ge.s32.totalorder %s903_s26, 1 }
   0x6   : > { %p236_p2 = scmp.lt.s32.totalorder %s903_s26, 9 }
   0x7   : > { %s1070_s0 = smov (%p34_p0, %s32_s0), 0  ;;  %s1072_s1 = smov (!%p34_p0, %s36_s1), %s899_s25 }
   0x8   : > { %1060 = sst [smem:[#allocation8_spill]] %s1070_s0  ;;  %p237_p3 = pnand %p760_p1, %p236_p2 }
   0x9   : > { %p38_p4 = scmp.ge.s32.totalorder %s1072_s1, 4  ;;  %s983_s27 = sld [smem:[#allocation6]] (!%p237_p3) }
   0xa   : > { %240 = sbr.rel (%p237_p3) target bundleno = 1319 (0x527), region = 32  ;;  %p301_p5 = scmp.lt.s32.totalorder (!%p237_p3), %s891_s23, 11 }
   0xb   : > { %s1074_s1 = smov (%p38_p4, %s1072_s1), 0  ;;  %p303_p6 = scmp.lt.s32.totalorder (!%p237_p3), %s887_s22, 1 }
   0xc   : > { %1061 = sst [smem:[#allocation9_spill]] %s1074_s1  ;;  %s313_s28 = sadd.s32 (!%p237_p3), 4, %s891_s23 }
   0xd   : > { %s988_s30 = sld [smem:[#allocation7]] (!%p237_p3)  ;;  %p315_p7 = scmp.lt.s32.totalorder (!%p237_p3), %s313_s28, 11 }
   0xe   : > { %s328_s7 = sadd.s32 (!%p237_p3), 8, %s891_s23  ;;  %s1062_s2 = sld [smem:[#allocation10_spill]] (!%p237_p3) }
   0xf   : > { %s302_s29 = scalar_select %p301_p5, %s891_s23, 11 }
  0x10   : > { %s1076_s22 = smov (!%p303_p6, %s887_s22), 1  ;;  %p305_p8 = scmp.lt.s32.totalorder %s983_s27, 0 }
  0x11   : > { %s761_s6 = sshll.u32 %s302_s29, 1  ;;  %s1078_s28 = smov (!%p315_p7, %s313_s28), 11 }
  0x12   : > { %s306_s8 = scalar_select %p305_p8, %s983_s27, 0 }
  0x13   : > { %p319_p9 = scmp.lt.s32.totalorder %s988_s30, 0  ;;  %p330_p10 = scmp.lt.s32.totalorder %s328_s7, 11 }
  0x14   : > { %s307_s9 = sadd.s32 %s306_s8, %s1076_s22  ;;  %s763_s15 = sshll.u32 %s1078_s28, 1 }
  0x15   : > { %s309_s10 = sadd.s32 %s761_s6, %s307_s9  ;;  %s1080_s7 = smov (!%p330_p10, %s328_s7), 11 }
  0x16   : > { %s762_s11 = sshll.u32 %s309_s10, 2  ;;  %p344_p11 = scmp.lt.s32.totalorder %s891_s23, 3 }
  0x17   : > { %s997_s14 = scalar_lea.vmem %s1062_s2, %s762_s11  ;;  %s765_s19 = sshll.u32 %s1080_s7, 1 }
  0x18   : > { %s320_s16 = scalar_select %p319_p9, %s988_s30, 0 }
  0x19   : > { %s1082_s23 = smov (!%p344_p11, %s891_s23), 3  ;;  %p769_p12 = scmp.ne.s32.totalorder %s988_s30, 0 }
  0x1a   : > { %s321_s17 = sadd.s32 %s320_s16, %s1076_s22  ;;  %s767_s11 = sshll.u32 %s1082_s23, 1 }
  0x1b   : > { %s323_s18 = sadd.s32 %s763_s15, %s321_s17  ;;  %s338_s21 = sadd.s32 %s765_s19, %s321_s17 }
  0x1c   : > { %s764_s20 = sshll.u32 %s323_s18, 2  ;;  %s766_s1 = sshll.u32 %s338_s21, 2 }
  0x1d   : > { %s325_s6 = scalar_lea.vmem %s1056_s3, %s764_s20  ;;  %s340_s12 = scalar_lea.vmem %s1057_s4, %s766_s1 }
  0x1e   : > { %s352_s28 = sadd.s32 %s767_s11, %s307_s9  ;;  %362 = sbr.rel (%p769_p12) target bundleno = 38 (0x26), region = 36 }
  0x1f   : > { %s768_s13 = sshll.u32 %s352_s28, 2 }
  0x20   : > { %s1011_s15 = scalar_lea.vmem %s1058_s5, %s768_s13 }
  0x23   : > { %vm363_vm0 = vcmask 7168   ;;  %vm366_vm1 = vcmask 64512   ;;  %v905_v0 = vmov -inf   ;;  %v906_v1 = vmov 0.0  }
  0x24   : > { %364 = vst.msk [vmem:[#allocation2] sm:$0xff] %vm363_vm0, %v905_v0  ;;  %365 = vst.msk [vmem:[#allocation3] sm:$0xff] %vm363_vm0, %v906_v1 }
  0x25   : > { %367 = vst.msk [vmem:[#allocation4] sm:$0xff] %vm366_vm1, %v906_v1 }
  0x26 PF: > { %v1014_v2 = vld [vmem:[%s340_s12] sm:$0xf]  ;;  %vm371_vm2 = vcmask 64512   ;;  %v907_v4 = vmov 0.0   ;;  %vm908_vm3 = vmmov 0   ;;  %p771_p13 = scmp.ge.s32.totalorder %s988_s30, %s983_s27 }
  0x27   : > { %v369_v3 = vld [vmem:[%s325_s6] sm:$0xf]  ;;  %783 = vmatprep.subr.bf16.mxu0 %v907_v4  ;;  %785 = vmatprep.mubr.msk.bf16.mxu0 %vm908_vm3, %v907_v4 }
  0x28   : > { %v376_v5 = vsel %vm371_vm2, %v369_v3, 0  ;;  %v368_v6 = vld [vmem:[%s997_s14] sm:$0xf] }
  0x29   : > { %784 = vmatpush3.bf16.xpose.msra.mxu0 %v376_v5 }
  0x30   : > { %786 = vmatmul.mubr.msk.bf16.vlgmr.msra.gmra.mxu0 %vm371_vm2, %v368_v6 }
  0xf0   : > { %v412_v7 = vpop.f32.mrf.mxu0 }
  0xf2   : > { %v787_v8 = vpop.f32.mrf.mxu0  ;;  %421 = sbr.rel (%p771_p13) target bundleno = 731 (0x2db), region = 40 }
  0xf4   : > { %v415_v9 = vpop.f32.mrf.mxu0 }
  0xf6   : > { %v788_v10 = vpop.f32.mrf.mxu0 }
  0xf7   : > { %v423_v11 = vsel %vm371_vm2, %v412_v7, -inf  ;;  %v909_v12 = vmov 0   ;;  %v422_v13 = vld [vmem:[#allocation2] sm:$0xff]  ;;  %vm444_vm4 = vcmask 7168   ;;  %vm457_vm5 = vcmask 1043456   ;;  %v438_v27 = vld [vmem:[#allocation3] sm:$0xff] }
  0xf8   : > { %424 = vmax.xlane.f32.xlu0 %v423_v11  ;;  %852 = vset.pattern.permute.xlu1 %v909_v12  ;;  %v910_v17 = vmov 0.0   ;;  %v459_v18 = vsel %vm457_vm5, %v1014_v2, 0  ;;  %vm911_vm6 = vmmov 0   ;;  %v446_v31 = vld [vmem:[#allocation4] sm:$0xff] }
  0xf9   : > { %851 = vset.pattern.permute.xlu0 %v909_v12  ;;  %789 = vmatprep.subr.bf16.mxu0 %v910_v17 }
  0xfa   : > { %791 = vmatprep.mubr.msk.bf16.mxu0 %vm911_vm6, %v910_v17  ;;  %790 = vmatpush3.bf16.msra.mxu0 %v459_v18 }
 0x181   : > { %v425_v14 = vpop.xlane.xlu0 %424 }
 0x182   : > { %v426_v15 = vmax.f32 %v422_v13, %v425_v14 }
 0x184   : > { %v427_v16 = vsub.f32 %v422_v13, %v426_v15  ;;  %503 = vst.msk [vmem:[#allocation2] sm:$0xff] %vm444_vm4, %v426_v15  ;;  %432 = vperm.xlu0 %851, %v426_v15  }
 0x186   : > { %v428_v23 = vmul.f32 1.442695, %v427_v16 }
 0x1ff   : > { %v433_v19 = vpop.permute.xlu0 %432 }
 0x200   : > { %v435_v20 = vsub.f32 %v412_v7, %v433_v19 }
 0x202   : > { %v436_v21 = vmul.f32 1.442695, %v435_v20 }
 0x204   : > { %853 = vpow2.f32 %v436_v21 }
 0x205   : > { %855 = vpow2.f32 %v428_v23 }
 0x211   : > { %v854_v22 = vpop.eup %853 }
 0x212   : > { %v440_v24 = vsel %vm371_vm2, %v854_v22, 0.0  ;;  %v453_v25 = vpack.c.bf16 %v854_v22, %v854_v22  ;;  %v856_v26 = vpop.eup %855 }
 0x213   : > { %441 = vadd.xlane.f32.xlu1 %v440_v24  ;;  %v439_v28 = vmul.f32 %v856_v26, %v438_v27 }
 0x214   : > { %792 = vmatmul.mubr.msk.bf16.vlgmr.msra.gmra.mxu0 %vm371_vm2, %v453_v25 }
 0x224   : > { %449 = vperm.xlu1 %852, %v856_v26  }
 0x29c   : > { %v442_v29 = vpop.xlane.xlu1 %441 }
 0x29d   : > { %v443_v30 = vadd.f32 %v442_v29, %v439_v28 }
 0x29f   : > { %445 = vst.msk [vmem:[#allocation3] sm:$0xff] %vm444_vm4, %v443_v30 }
 0x2a0   : > { %v450_v32 = vpop.permute.xlu1 %449 }
 0x2a1   : > { %v452_v33 = vmul.f32 %v450_v32, %v446_v31 }
 0x2d4   : > { %v495_v34 = vpop.f32.mrf.mxu0 }
 0x2d5   : > { %v501_v35 = vadd.f32 %v495_v34, %v452_v33 }
 0x2d6   : > { %v793_v36 = vpop.f32.mrf.mxu0 }
 0x2d7   : > { %502 = vst.msk [vmem:[#allocation4] sm:$0xff] %vm371_vm2, %v501_v35 }
 0x2d8   : > { %v498_v37 = vpop.f32.mrf.mxu0 }
 0x2da   : > { %v794_v38 = vpop.f32.mrf.mxu0 }
 0x2db PF: > { %p773_p0 = scmp.ne.s32.totalorder %s988_s30, %s983_s27 }
 0x2dd   : > { %507 = sbr.rel (%p773_p0) target bundleno = 1319 (0x527), region = 44 }
 0x2e2   : > { %v508_v39 = vlaneseq  ;;  %v912_v44 = vmov 0   ;;  %v514_v45 = vld [vmem:[#allocation2] sm:$0xff]  ;;  %vm536_vm8 = vcmask 7168   ;;  %vm549_vm9 = vcmask 1043456   ;;  %v530_v59 = vld [vmem:[#allocation3] sm:$0xff]  ;;  %v538_v1 = vld [vmem:[#allocation4] sm:$0xff] }
 0x2e3   : > { %857 = vset.pattern.permute.xlu0 %v912_v44  ;;  %858 = vset.pattern.permute.xlu1 %v912_v44  ;;  %v913_v49 = vmov 0.0   ;;  %v551_v50 = vsel %vm549_vm9, %v1014_v2, 0  ;;  %vm914_vm10 = vmmov 0   ;;  %vm606_vm11 = vcmask 60416  }
 0x2e4   : > { %v509_v40 = vshrl.u32 %v508_v39, 7  ;;  %v511_v41 = vand.u32 127, %v508_v39  ;;  %795 = vmatprep.subr.bf16.mxu0 %v913_v49  ;;  %797 = vmatprep.mubr.msk.bf16.mxu0 %vm914_vm10, %v913_v49 }
 0x2e5   : > { %796 = vmatpush3.bf16.msra.mxu0 %v551_v50 }
 0x2e6   : > { %vm512_vm7 = vcmp.le.s32.totalorder %v511_v41, %v509_v40 }
 0x2e7   : > { %v513_v42 = vsel %vm512_vm7, %v412_v7, -1e+30 }
 0x2e8   : > { %v515_v43 = vsel %vm371_vm2, %v513_v42, -inf }
 0x2e9   : > { %516 = vmax.xlane.f32.xlu0 %v515_v43 }
 0x372   : > { %v517_v46 = vpop.xlane.xlu0 %516 }
 0x373   : > { %v518_v47 = vmax.f32 %v514_v45, %v517_v46 }
 0x375   : > { %v519_v48 = vsub.f32 %v514_v45, %v518_v47  ;;  %595 = vst.msk [vmem:[#allocation2] sm:$0xff] %vm536_vm8, %v518_v47  ;;  %524 = vperm.xlu0 %857, %v518_v47  }
 0x377   : > { %v520_v55 = vmul.f32 1.442695, %v519_v48 }
 0x3f0   : > { %v525_v51 = vpop.permute.xlu0 %524 }
 0x3f1   : > { %v527_v52 = vsub.f32 %v513_v42, %v525_v51 }
 0x3f3   : > { %v528_v53 = vmul.f32 1.442695, %v527_v52 }
 0x3f5   : > { %859 = vpow2.f32 %v528_v53 }
 0x3f6   : > { %861 = vpow2.f32 %v520_v55 }
 0x402   : > { %v860_v54 = vpop.eup %859 }
 0x403   : > { %v532_v56 = vsel %vm371_vm2, %v860_v54, 0.0  ;;  %v545_v57 = vpack.c.bf16 %v860_v54, %v860_v54  ;;  %v862_v58 = vpop.eup %861 }
 0x404   : > { %533 = vadd.xlane.f32.xlu1 %v532_v56  ;;  %v531_v60 = vmul.f32 %v862_v58, %v530_v59 }
 0x405   : > { %798 = vmatmul.mubr.msk.bf16.vlgmr.msra.gmra.mxu0 %vm371_vm2, %v545_v57 }
 0x415   : > { %541 = vperm.xlu1 %858, %v862_v58  }
 0x48d   : > { %v534_v61 = vpop.xlane.xlu1 %533 }
 0x48e   : > { %v535_v62 = vadd.f32 %v534_v61, %v531_v60 }
 0x490   : > { %537 = vst.msk [vmem:[#allocation3] sm:$0xff] %vm536_vm8, %v535_v62 }
 0x491   : > { %v542_v2 = vpop.permute.xlu1 %541 }
 0x492   : > { %v544_v3 = vmul.f32 %v542_v2, %v538_v1 }
 0x497   : > { %v597_v63 = vld [vmem:[#allocation3] sm:$0xff] }
 0x498   : > { %863 = vrcp.f32 %v597_v63 }
 0x4a5   : > { %v864_v0 = vpop.eup %863 }
 0x4a6   : > { %601 = vperm.xlu1 %858, %v864_v0  }
 0x4c5   : > { %v587_v4 = vpop.f32.mrf.mxu0 }
 0x4c6   : > { %v593_v5 = vadd.f32 %v587_v4, %v544_v3 }
 0x4c7   : > { %v799_v6 = vpop.f32.mrf.mxu0 }
 0x4c8   : > { %594 = vst.msk [vmem:[#allocation4] sm:$0xff] %vm371_vm2, %v593_v5 }
 0x4c9   : > { %v590_v7 = vpop.f32.mrf.mxu0 }
 0x4cb   : > { %v800_v8 = vpop.f32.mrf.mxu0 }
 0x4cf   : > { %v596_v9 = vld [vmem:[#allocation4] sm:$0xff] }
 0x521   : > { %v602_v10 = vpop.permute.xlu1 %601 }
 0x522   : > { %v604_v11 = vmul.f32 %v602_v10, %v596_v9 }
 0x524   : > { %v605_v12 = vpack.c.bf16 %v604_v11, %v604_v11 }
 0x526   : > { %607 = vst.msk [vmem:[%s1011_s15] sm:$0xf] %vm606_vm11, %v605_v12 }
 0x527 PF: > { %s17_s26 = sadd.s32 1, %s903_s26   ;;  %s1063_s2 = sld [smem:[#allocation8_spill]] }
 0x528   : > { %p14_p1 = scmp.ge.s32.totalorder %s17_s26, 10   ;;  %s1064_s0 = sld [smem:[#allocation9_spill]] }
 0x529   : > { %s1065_s22 = smov %s895_s24  ;;  %s1066_s23 = smov %s899_s25 }
 0x52a   :  { %16 = sbr.rel (!%p14_p1) target bundleno = 4 (0x4), region = 80 }
 0x52d   : > { %s1067_s24 = smov %s1063_s2 }
 0x52e   : > { %s1068_s25 = smov %s1064_s0 }

// kernel: transformer_lm_forward.15
= control target key start
LH: loop header
LB: loop body
LE: loop exit
PB: predicated region body
PF: predicated region fallthrough
CT: control target
= control target key end

     0   :  { %vm22_vm0 = vcmask 261120   ;;  %v238_v0 = vmov 0.0   ;;  %vm239_vm1 = vmmov 0   ;;  %vm173_vm2 = vcmask 257024   ;;  %s308_s1 = inlined_call_operand.vmem [shape: bf16[128,32], index: 1, kind: input, shape index: {}]   ;;  %s309_s0 = inlined_call_operand.vmem [shape: bf16[16,128], index: 0, kind: input, shape index: {}]   ;;  %s310_s3 = inlined_call_operand.vmem [shape: bf16[16,32], index: 3, kind: input, shape index: {}]   ;;  %s311_s2 = inlined_call_operand.vmem [shape: f32[1,32], index: 2, kind: input, shape index: {}]   ;;  %s312_s4 = inlined_call_operand.vmem [shape: bf16[16,32], index: 4, kind: output, shape index: {}]  }
   0x1   :  { %207 = vmatprep.subr.bf16.mxu0 %v238_v0  ;;  %v229_v1 = vld [vmem:[%s308_s1 + $0x38] sm:$0xff]   ;;  %223 = vmatprep.mubr.msk.bf16.mxu0 %vm239_vm1, %v238_v0  ;;  %23 = vst.msk [vmem:[#allocation2] sm:$0xff] %vm22_vm0, %v238_v0  ;;  %24 = vst.msk [vmem:[#allocation2 + $0x8] sm:$0xff] %vm22_vm0, %v238_v0  ;;  %v230_v2 = vld [vmem:[%s308_s1 + $0x30] sm:$0xff]  }
   0x2   :  { %208 = vmatpush3.bf16.msra.mxu0 %v229_v1  ;;  %v231_v3 = vld [vmem:[%s308_s1 + $0x28] sm:$0xff]   ;;  %v232_v4 = vld [vmem:[%s308_s1 + $0x20] sm:$0xff]   ;;  %v233_v5 = vld [vmem:[%s308_s1 + $0x18] sm:$0xff]  }
   0x3   :  { %209 = vmatprep.subr.bf16.mxu0 %v238_v0  ;;  %v234_v6 = vld [vmem:[%s308_s1 + $0x10] sm:$0xff]   ;;  %v235_v7 = vld [vmem:[%s308_s1 + $0x8] sm:$0xff]   ;;  %v236_v8 = vld [vmem:[%s308_s1] sm:$0xff]  }
   0x4   :  { %v237_v9 = vld [vmem:[%s309_s0] sm:$0xff]  }
   0x5   :  { %v195_v17 = vld [vmem:[%s310_s3] sm:$0xff]  }
   0x6   :  { %210 = vmatpush3.bf16.msra.mxu0 %v230_v2  ;;  %v189_v19 = vld [vmem:[%s311_s2] ss:$0 sm:$0xff]  ;;  %v196_v20 = vunpack.c.l.bf16 %v195_v17  ;;  %v197_v24 = vunpack.c.h.bf16 %v195_v17 }
   0x7   :  { %211 = vmatprep.subr.bf16.mxu0 %v238_v0 }
   0x8   :  { %v25_v10 = vld [vmem:[#allocation2] sm:$0xff]  ;;  %v26_v14 = vld [vmem:[#allocation2 + $0x8] sm:$0xff] }
   0xa   :  { %212 = vmatpush3.bf16.msra.mxu0 %v231_v3 }
   0xb   :  { %213 = vmatprep.subr.bf16.mxu0 %v238_v0 }
   0xe   :  { %214 = vmatpush3.bf16.msra.mxu0 %v232_v4 }
   0xf   :  { %215 = vmatprep.subr.bf16.mxu0 %v238_v0 }
  0x12   :  { %216 = vmatpush3.bf16.msra.mxu0 %v233_v5 }
  0x13   :  { %217 = vmatprep.subr.bf16.mxu0 %v238_v0 }
  0x16   :  { %218 = vmatpush3.bf16.msra.mxu0 %v234_v6 }
  0x17   :  { %219 = vmatprep.subr.bf16.mxu0 %v238_v0 }
  0x1a   :  { %220 = vmatpush3.bf16.msra.mxu0 %v235_v7 }
  0x1b   :  { %221 = vmatprep.subr.bf16.mxu0 %v238_v0 }
  0x1e   :  { %222 = vmatpush3.bf16.msra.mxu0 %v236_v8 }
  0x21   :  { %224 = vmatmul.mubr.bf16.vlgmr.msra.gmra.mxu0 %v237_v9 }
  0xe1   :  { %v133_v11 = vpop.f32.mrf.mxu0 }
  0xe2   :  { %v140_v12 = vadd.f32 %v133_v11, %v25_v10 }
  0xe3   :  { %v225_v13 = vpop.f32.mrf.mxu0 }
  0xe4   :  { %143 = vst.msk [vmem:[#allocation2] sm:$0xff] %vm22_vm0, %v140_v12 }
  0xe5   :  { %v136_v15 = vpop.f32.mrf.mxu0 }
  0xe6   :  { %v141_v16 = vadd.f32 %v136_v15, %v26_v14 }
  0xe7   :  { %v226_v18 = vpop.f32.mrf.mxu0 }
  0xe8   :  { %144 = vst.msk [vmem:[#allocation2 + $0x8] sm:$0xff] %vm22_vm0, %v141_v16 }
  0xeb   :  { %v148_v21 = vld [vmem:[#allocation2] sm:$0xff] }
  0xec   :  { %v157_v22 = vadd.f32 %v189_v19, %v148_v21 }
  0xee   :  { %v163_v23 = vadd.f32 %v196_v20, %v157_v22 }
  0xef   :  { %v149_v25 = vld [vmem:[#allocation2 + $0x8] sm:$0xff] }
  0xf0   :  { %v192_v26 = vpack.c.bf16 %v163_v23, %v163_v23  ;;  %v158_v27 = vadd.f32 %v189_v19, %v149_v25 }
  0xf2   :  { %174 = vst.msk [vmem:[%s312_s4] sm:$0xf] %vm173_vm2, %v192_v26  ;;  %v164_v28 = vadd.f32 %v197_v24, %v158_v27 }
  0xf4   :  { %v193_v29 = vpack.c.bf16 %v164_v28, %v164_v28 }
  0xf6   :  { %175 = vst.msk [vmem:[%s312_s4 + $0x4] sm:$0xf] %vm173_vm2, %v193_v29 }

// kernel: transformer_lm_forward.21
= control target key start
LH: loop header
LB: loop body
LE: loop exit
PB: predicated region body
PF: predicated region fallthrough
CT: control target
= control target key end

     0   :  { %vm30_vm0 = vcmask 261120   ;;  %s302_s0 = inlined_call_operand.vmem [shape: bf16[16,32], index: 0, kind: input, shape index: {}]   ;;  %s303_s1 = inlined_call_operand.vmem [shape: f32[1,32], index: 1, kind: input, shape index: {}]   ;;  %s304_s2 = inlined_call_operand.vmem [shape: f32[1,32], index: 2, kind: input, shape index: {}]   ;;  %s305_s3 = inlined_call_operand.vmem [shape: bf16[32,64], index: 3, kind: input, shape index: {}]   ;;  %s306_s4 = inlined_call_operand.vmem [shape: f32[1,64], index: 4, kind: input, shape index: {}]   ;;  %s307_s5 = inlined_call_operand.hbm [shape: f32[16,64], index: 5, kind: output, shape index: {}]  }
   0x1   :  { %v193_v0 = vld [vmem:[%s302_s0] sm:$0xff]  }
   0x2   :  { %v194_v1 = vunpack.c.l.bf16 %v193_v0  ;;  %v195_v2 = vunpack.c.h.bf16 %v193_v0 }
   0x3   :  { %10 = vsyncpa [#allocation4], 0  ;;  %v212_v15 = vld [vmem:[%s305_s3 + $0x8] sm:$0xff]   ;;  %v241_v16 = vmov 0.0   ;;  %vm242_vm1 = vmmov 0   ;;  %v213_v17 = vld [vmem:[%s305_s3] sm:$0xff]  }
   0x4   :  { %v31_v3 = vsel %vm30_vm0, %v194_v1, 0.0  ;;  %v34_v4 = vsel %vm30_vm0, %v195_v2, 0.0  ;;  %199 = vmatprep.subr.bf16.mxu0 %v241_v16  ;;  %203 = vmatprep.mubr.msk.bf16.mxu0 %vm242_vm1, %v241_v16  ;;  %v181_v25 = vld [vmem:[%s303_s1] ss:$0 sm:$0xff]  ;;  %vm84_vm2 = vcmask 257024   ;;  %vm162_vm3 = vcmask 523264  }
   0x5   :  { %32 = vadd.xlane.f32.xlu0 %v31_v3  ;;  %200 = vmatpush3.bf16.msra.mxu0 %v212_v15  ;;  %v182_v27 = vld [vmem:[%s304_s2] ss:$0 sm:$0xff]  ;;  %s243_s2 = smov [#allocation3]  }
   0x6   :  { %201 = vmatprep.subr.bf16.mxu0 %v241_v16  ;;  %v185_v37 = vld [vmem:[%s306_s4] ss:$0 sm:$0xff]  ;;  %s170_s27 = sshll.u32 %s243_s2, 4  ;;  %s171_s27 = int_to_ptr.vmem [resolvable:$true] %s170_s27 }
   0x7   :  { %s219_s28 = scalar_lea.vmem %s171_s27, 256  ;;  %p224_p1 = scmp.lt.s32.totalorder %s171_s27, %s171_s27 }
   0x8   :  { %p220_p0 = scmp.ne.s32.totalorder %s171_s27, %s219_s28  ;;  %p225_p2 = scmp.lt.s32.totalorder %s219_s28, %s219_s28 }
   0x9   :  { %35 = vadd.xlane.f32.xlu0 %v34_v4  ;;  %202 = vmatpush3.bf16.msra.mxu0 %v213_v17 }
   0xa   :  { %p226_p3 = por %p225_p2, %p224_p1 }
   0xc   :  { %p227_p4 = pnand %p226_p3, %p220_p0 }
  0x8e   :  { %v33_v5 = vpop.xlane.xlu0 %32 }
  0x8f   :  { %v38_v6 = vmul.f32 0.03125, %v33_v5 }
  0x91   :  { %v40_v7 = vsub.f32 %v194_v1, %v38_v6 }
  0x92   :  { %v36_v8 = vpop.xlane.xlu0 %35 }
  0x93   :  { %v39_v9 = vmul.f32 0.03125, %v36_v8  ;;  %v42_v10 = vmul.f32 %v40_v7, %v40_v7 }
  0x95   :  { %v41_v11 = vsub.f32 %v195_v2, %v39_v9  ;;  %v44_v12 = vsel %vm30_vm0, %v42_v10, 0.0 }
  0x96   :  { %45 = vadd.xlane.f32.xlu1 %v44_v12 }
  0x97   :  { %v43_v13 = vmul.f32 %v41_v11, %v41_v11 }
  0x99   :  { %v47_v14 = vsel %vm30_vm0, %v43_v13, 0.0 }
  0x9a   :  { %48 = vadd.xlane.f32.xlu1 %v47_v14 }
 0x11f   :  { %v46_v18 = vpop.xlane.xlu1 %45 }
 0x120   :  { %v50_v19 = vmul.f32 0.03125, %v46_v18 }
 0x122   :  { %v52_v20 = vadd.f32 1e-05, %v50_v19 }
 0x123   :  { %v49_v21 = vpop.xlane.xlu1 %48 }
 0x124   :  { %215 = vrsqrt.f32 %v52_v20  ;;  %v51_v22 = vmul.f32 0.03125, %v49_v21 }
 0x126   :  { %v53_v23 = vadd.f32 1e-05, %v51_v22 }
 0x128   :  { %217 = vrsqrt.f32 %v53_v23 }
 0x131   :  { %v216_v24 = vpop.eup %215 }
 0x132   :  { %v56_v26 = vmul.f32 %v216_v24, %v40_v7 }
 0x134   :  { %v65_v28 = vmul.f32 %v181_v25, %v56_v26 }
 0x135   :  { %v218_v29 = vpop.eup %217 }
 0x136   :  { %v74_v30 = vadd.f32 %v182_v27, %v65_v28  ;;  %v57_v31 = vmul.f32 %v218_v29, %v41_v11 }
 0x138   :  { %v190_v32 = vpack.c.bf16 %v74_v30, %v74_v30  ;;  %v66_v33 = vmul.f32 %v181_v25, %v57_v31 }
 0x13a   :  { %85 = vst.msk [vmem:[#allocation2] sm:$0xf] %vm84_vm2, %v190_v32  ;;  %v75_v34 = vadd.f32 %v182_v27, %v66_v33 }
 0x13c   :  { %v191_v35 = vpack.c.bf16 %v75_v34, %v75_v34 }
 0x13e   :  { %86 = vst.msk [vmem:[#allocation2 + $0x4] sm:$0xf] %vm84_vm2, %v191_v35 }
 0x145   :  { %v214_v36 = vld [vmem:[#allocation2] sm:$0xff]  }
 0x146   :  { %204 = vmatmul.mubr.msk.bf16.vlgmr.msra.gmra.mxu0 %vm30_vm0, %v214_v36 }
 0x206   :  { %v155_v38 = vpop.f32.mrf.mxu0 }
 0x207   :  { %v156_v39 = vadd.f32 %v185_v37, %v155_v38 }
 0x208   :  { %v205_v40 = vpop.f32.mrf.mxu0 }
 0x209   :  { %163 = vst.msk [vmem:[#allocation3] sm:$0xff] %vm162_vm3, %v156_v39 }
 0x20a   :  { %v158_v41 = vpop.f32.mrf.mxu0 }
 0x20b   :  { %v159_v42 = vadd.f32 %v185_v37, %v158_v41 }
 0x20c   :  { %v206_v43 = vpop.f32.mrf.mxu0 }
 0x20d   :  { %164 = vst.msk [vmem:[#allocation3 + $0x8] sm:$0xff] %vm162_vm3, %v159_v42 }
 0x20e   :  { %230 = shalt.err (!%p227_p4)
}
 0x20f   :  { %s244_s4 = smov 128   ;;  %s245_s29 = smov 8  }
 0x210   :  { %176 = dma.vmem_to_hbm [thread:$0]  %s171_s27, 256, %s307_s5, [#allocation4], %s244_s4, %s244_s4, %s245_s29  }
 0x211   :  { %239 = dma.done.wait [#allocation4], 256  }
 0x212   :  { %240 = vsyncadd [#allocation4], 4294967040 }
 0x213   :  { %180 = vsyncpa [#allocation4], 1 }

</bundles_post_ra>
